<compile_context>
chip_gen: v7x
topology: tpu7x:2x2x1
jax: 0.10.0
libtpu: 0.0.40
codegen_flags: <defaults>
</compile_context>

<pallas_src>
import functools

import jax
import jax.numpy as jnp
from jax.experimental import pallas as pl
from jax.experimental.pallas import tpu as pltpu

EXPANSION = 4
CPAD = 8   # left/right column padding of the conv1 scratch (sublane aligned)


# ---------------------------------------------------------------------------
# Fused bottleneck kernel. grid = (N, H // TH); one step == TH output rows.
# ---------------------------------------------------------------------------
def bottleneck_kernel(x_ref, w1_ref, w2_ref, w3_ref, b1_ref, b2_ref, b3_ref,
                      out_ref, apad_ref, *, H, W, TH, dilation):
    d = dilation
    Cin = x_ref.shape[-1]
    wp = w1_ref.shape[-1]          # lane-padded width
    outc = w3_ref.shape[-1]
    rows, cols = apad_ref.shape[0], apad_ref.shape[1]
    r = pl.program_id(1)

    # ---- once per image: halo zero + conv1 over the full plane -------------
    @pl.when(r == 0)
    def _():
        # Zero ONLY the halo border (scratch persists across grid steps and
        # the interior is fully overwritten below).
        def z(shape):
            return jnp.zeros(shape, jnp.bfloat16)
        apad_ref[:, :CPAD, :] = z((rows, CPAD, wp))                 # left cols
        apad_ref[:, CPAD + W:, :] = z((rows, cols - CPAD - W, wp))  # right cols
        apad_ref[:d, CPAD:CPAD + W, :] = z((d, W, wp))              # top rows
        apad_ref[d + H:, CPAD:CPAD + W, :] = z((rows - d - H, W, wp))  # bottom

        # conv1 (1x1, BN scale folded into w1) + shift + ReLU, stored bf16.
        xm = x_ref[0].reshape(H * W, Cin)
        a = jnp.dot(xm, w1_ref[...], preferred_element_type=jnp.float32)
        a = jnp.maximum(a + b1_ref[...], 0.0).astype(jnp.bfloat16)
        apad_ref[d:d + H, CPAD:CPAD + W, :] = a.reshape(H, W, wp)

    # ---- conv2 (3x3, dilation=d, padding=d) as ONE K = 9*wp GEMM ------------
    row0 = pl.multiple_of(r * TH, TH)
    taps = [apad_ref[pl.ds(row0 + ky * d, TH),
                     CPAD - d + kx * d:CPAD - d + kx * d + W, :]
            .reshape(TH * W, wp)
            for ky in range(3) for kx in range(3)]
    t = jnp.concatenate(taps, axis=-1)                   # (TH*W, 9*wp) bf16
    b = jnp.dot(t, w2_ref[...], preferred_element_type=jnp.float32)
    b = jnp.maximum(b + b2_ref[...], 0.0)                # (TH*W, wp) f32

    # ---- conv3 (1x1) + shift ------------------------------------------------
    c = jnp.dot(b.astype(jnp.bfloat16), w3_ref[...],
                preferred_element_type=jnp.float32)
    c = c + b3_ref[...]                                  # (TH*W, outc) f32

    # ---- residual add + ReLU ------------------------------------------------
    ident = x_ref[0, pl.ds(row0, TH), :, :].reshape(TH * W, Cin)
    out = jnp.maximum(c + ident.astype(jnp.float32), 0.0)
    out_ref[0] = out.reshape(TH, W, outc).astype(out_ref.dtype)


# ---------------------------------------------------------------------------
# Wrapper (BN-scale folding, lane padding, pallas_call plumbing)
# ---------------------------------------------------------------------------
def bottleneck_forward(x_nchw, p, *, dilation=1):
    # TODO(synk): stride != 1, groups != 1 and a downsample module are not
    # implemented (this configuration is stride=1, groups=1, downsample=None).
    N, Cin, H, W = x_nchw.shape
    width = p['w1'].shape[-1]
    outc = p['w3'].shape[-1]
    d = dilation
    assert Cin == outc, "identity residual requires inplanes == planes * expansion"
    assert d <= CPAD

    wp = ((width + 127) // 128) * 128          # lane-pad width to 128 multiple
    pad_w = wp - width
    TH = 8 if (H % 8 == 0 and H > 8) else H    # spatial row-block size
    R = H // TH

    x = jnp.transpose(x_nchw, (0, 2, 3, 1)).astype(jnp.bfloat16)   # NHWC bf16

    # Fold BN scales into the conv weights (inference-mode identity), zero-pad
    # width channels to wp, cast to bf16.  Only the shifts go to the kernel.
    w1 = jnp.pad(p['w1'] * p['s1'], ((0, 0), (0, pad_w))).astype(jnp.bfloat16)
    w2 = jnp.pad(p['w2'] * p['s2'],
                 ((0, 0), (0, 0), (0, pad_w), (0, pad_w)))
    w2 = w2.reshape(9 * wp, wp).astype(jnp.bfloat16)     # (ky,kx,ci)-major
    w3 = jnp.pad(p['w3'] * p['s3'], ((0, pad_w), (0, 0))).astype(jnp.bfloat16)
    b1 = jnp.pad(p['b1'], ((0, 0), (0, pad_w)))
    b2 = jnp.pad(p['b2'], ((0, 0), (0, pad_w)))
    b3 = p['b3']

    # Explicit VMEM budget from actual block sizes (floor 32 MiB, cap 64 MiB).
    est = (
        2 * H * W * Cin * 2                                # x image block x2
        + 2 * TH * W * outc * 4                            # out block x2
        + (H + 2 * d) * (W + 2 * CPAD) * wp * 2            # persistent scratch
        + (Cin * wp + 9 * wp * wp + wp * outc) * 2         # weights
        + (2 * wp + outc) * 4                              # shifts
        + H * W * wp * 4                                   # conv1 f32 temp
        + 2 * TH * W * 9 * wp * 2                          # im2col temp
        + TH * W * (wp + 2 * outc + Cin) * 4               # b/c/ident/out temps
    )
    vmem_limit = int(min(max(2 * est, 32 * 1024 * 1024), 64 * 1024 * 1024))

    kern = functools.partial(bottleneck_kernel, H=H, W=W, TH=TH, dilation=d)

    def const(shape):
        return pl.BlockSpec(shape, lambda n, r: (0,) * len(shape))

    out_nhwc = pl.pallas_call(
        kern,
        out_shape=jax.ShapeDtypeStruct((N, H, W, outc), jnp.float32),
        grid=(N, R),
        in_specs=[
            # Full image per batch index (fetched once per image; block index
            # does not change across the row axis).
            pl.BlockSpec((1, H, W, Cin), lambda n, r: (n, 0, 0, 0)),
            const((Cin, wp)),                    # w1 (scale folded)
            const((9 * wp, wp)),                 # w2 (im2col layout)
            const((wp, outc)),                   # w3
            const((1, wp)),                      # bn1 shift
            const((1, wp)),                      # bn2 shift
            const((1, outc)),                    # bn3 shift
        ],
        out_specs=pl.BlockSpec((1, TH, W, outc), lambda n, r: (n, r, 0, 0)),
        scratch_shapes=[pltpu.VMEM((H + 2 * d, W + 2 * CPAD, wp), jnp.bfloat16)],
        compiler_params=pltpu.CompilerParams(
            dimension_semantics=("parallel", "arbitrary"),
            vmem_limit_bytes=vmem_limit),
    )(x, w1, w2, w3, b1, b2, b3)

    return jnp.transpose(out_nhwc, (0, 3, 1, 2))                   # back to NCHW


# ---------------------------------------------------------------------------
# Deterministic synthetic parameters (shapes match the PyTorch __init__)
# ---------------------------------------------------------------------------
def init_params(key, inplanes, planes, base_width=64, groups=1):
    width = int(planes * (base_width / 64.0)) * groups
    outc = planes * EXPANSION
    ks = jax.random.split(key, 6)

    def w(k, shape, fan_in):
        return jax.random.normal(k, shape, jnp.float32) / jnp.sqrt(float(fan_in))

    def bn(k, c):
        k1, k2, k3, k4 = jax.random.split(k, 4)
        gamma = jax.random.uniform(k1, (c,), jnp.float32, 0.5, 1.5)
        beta = 0.1 * jax.random.normal(k2, (c,), jnp.float32)
        mean = 0.1 * jax.random.normal(k3, (c,), jnp.float32)
        var = jax.random.uniform(k4, (c,), jnp.float32, 0.5, 1.5)
        scale = gamma / jnp.sqrt(var + 1e-5)
        shift = beta - mean * scale
        return scale[None, :], shift[None, :]

    w1 = w(ks[0], (inplanes, width), inplanes)        # conv1 as (Cin, width)
    w2 = w(ks[1], (3, 3, width, width), 9 * width)    # conv2 as HWIO
    w3 = w(ks[2], (width, outc), width)               # conv3 as (width, outc)
    s1, b1 = bn(ks[3], width)
    s2, b2 = bn(ks[4], width)
    s3, b3 = bn(ks[5], outc)
    return dict(w1=w1, w2=w2, w3=w3, s1=s1, b1=b1, s2=s2, b2=b2, s3=s3, b3=b3)


# ---------------------------------------------------------------------------
# Pure-JAX reference (PyTorch forward with inference-mode BN folded, same
# bf16 weight/activation policy as the kernel)
# ---------------------------------------------------------------------------
def reference_forward(x_nchw, p, *, dilation=1):
    d = dilation
    x = jnp.transpose(x_nchw, (0, 2, 3, 1)).astype(jnp.bfloat16)
    w1f = (p['w1'] * p['s1']).astype(jnp.bfloat16)
    w2f = (p['w2'] * p['s2']).astype(jnp.bfloat16)
    w3f = (p['w3'] * p['s3']).astype(jnp.bfloat16)
    a = jnp.einsum('nhwc,co->nhwo', x, w1f, preferred_element_type=jnp.float32)
    a = jnp.maximum(a + p['b1'][0], 0.0)
    b = jax.lax.conv_general_dilated(
        a.astype(jnp.bfloat16), w2f,
        window_strides=(1, 1), padding=((d, d), (d, d)), rhs_dilation=(d, d),
        dimension_numbers=('NHWC', 'HWIO', 'NHWC'),
        preferred_element_type=jnp.float32)
    b = jnp.maximum(b + p['b2'][0], 0.0)
    c = jnp.einsum('nhwc,co->nhwo', b.astype(jnp.bfloat16), w3f,
                   preferred_element_type=jnp.float32)
    c = c + p['b3'][0]
    out = jnp.maximum(c + x.astype(jnp.float32), 0.0)
    return jnp.transpose(out, (0, 3, 1, 2))


if __name__ == "__main__":
    # inplanes == planes * expansion so the identity residual is valid
    # (stride=1, downsample=None, groups=1, base_width=64 -> width = planes).
    inplanes, planes = 128, 32            # width = 32 (padded to 128), outc = 128
    N, H, W = 2, 16, 16

    key = jax.random.PRNGKey(0)
    params = init_params(key, inplanes, planes)
    x = jax.random.normal(jax.random.fold_in(key, 123),
                          (N, inplanes, H, W), jnp.float32)   # NCHW (PyTorch layout)

    fwd = jax.jit(functools.partial(bottleneck_forward, p=params))
    out = jax.block_until_ready(fwd(x))

    ref = jax.block_until_ready(reference_forward(x, params))
    assert out.shape == (N, planes * EXPANSION, H, W)
    err = jnp.max(jnp.abs(out - ref))
    assert jnp.allclose(out, ref, rtol=1e-2, atol=1e-2), f"max abs err {err}"

    print("KERNEL_OK")
</pallas_src>

<mosaic_0001>
module attributes {stable_mosaic.version = 11 : i64} {
  func.func @bottleneck_kernel(%arg0: i32, %arg1: i32, %arg2: memref<1x16x16x128xbf16, #tpu.memory_space<vmem>>, %arg3: memref<128x128xbf16, #tpu.memory_space<vmem>>, %arg4: memref<1152x128xbf16, #tpu.memory_space<vmem>>, %arg5: memref<128x128xbf16, #tpu.memory_space<vmem>>, %arg6: memref<1x128xf32, #tpu.memory_space<vmem>>, %arg7: memref<1x128xf32, #tpu.memory_space<vmem>>, %arg8: memref<1x128xf32, #tpu.memory_space<vmem>>, %arg9: memref<1x8x16x128xf32, #tpu.memory_space<vmem>>, %arg10: memref<18x32x128xbf16, #tpu.memory_space<vmem>>) attributes {dimension_semantics = [#tpu.dimension_semantics<parallel>, #tpu.dimension_semantics<arbitrary>], iteration_bounds = array<i64: 2, 2>, scalar_prefetch = 0 : i64, scratch_operands = 1 : i64, tpu.core_type = #tpu.core_type<tc>, window_params = [{transform_indices = @transform_0, window_bounds = array<i64: 1, 16, 16, 128>}, {pipeline_mode = #tpu.pipeline_mode<synchronous>, transform_indices = @transform_1, window_bounds = array<i64: 128, 128>}, {pipeline_mode = #tpu.pipeline_mode<synchronous>, transform_indices = @transform_2, window_bounds = array<i64: 1152, 128>}, {pipeline_mode = #tpu.pipeline_mode<synchronous>, transform_indices = @transform_3, window_bounds = array<i64: 128, 128>}, {pipeline_mode = #tpu.pipeline_mode<synchronous>, transform_indices = @transform_4, window_bounds = array<i64: 1, 128>}, {pipeline_mode = #tpu.pipeline_mode<synchronous>, transform_indices = @transform_5, window_bounds = array<i64: 1, 128>}, {pipeline_mode = #tpu.pipeline_mode<synchronous>, transform_indices = @transform_6, window_bounds = array<i64: 1, 128>}, {transform_indices = @transform_7, window_bounds = array<i64: 1, 8, 16, 128>}]} {
    %c0_i32 = arith.constant 0 : i32
    %0 = arith.cmpi eq, %arg1, %c0_i32 : i32
    %1 = arith.extui %0 : i1 to i32
    %c0_i32_0 = arith.constant 0 : i32
    %2 = arith.cmpi ne, %1, %c0_i32_0 : i32
    scf.if %2 {
      %cst_40 = arith.constant 0.000000e+00 : bf16
      %67 = vector.broadcast %cst_40 : bf16 to vector<18x8x128xbf16>
      %c0_41 = arith.constant 0 : index
      %c0_42 = arith.constant 0 : index
      %c0_43 = arith.constant 0 : index
      %68 = vector.load %arg10[%c0_41, %c0_42, %c0_43] : memref<18x32x128xbf16, #tpu.memory_space<vmem>>, vector<18x8x128xbf16>
      tpu.vector_store %arg10[%c0_41, %c0_42, %c0_43], %67 {strides = array<i32>} : memref<18x32x128xbf16, #tpu.memory_space<vmem>>, vector<18x8x128xbf16>,
      %cst_44 = arith.constant 0.000000e+00 : bf16
      %69 = vector.broadcast %cst_44 : bf16 to vector<18x8x128xbf16>
      %c0_45 = arith.constant 0 : index
      %c24 = arith.constant 24 : index
      %c0_46 = arith.constant 0 : index
      %70 = vector.load %arg10[%c0_45, %c24, %c0_46] : memref<18x32x128xbf16, #tpu.memory_space<vmem>>, vector<18x8x128xbf16>
      tpu.vector_store %arg10[%c0_45, %c24, %c0_46], %69 {strides = array<i32>} : memref<18x32x128xbf16, #tpu.memory_space<vmem>>, vector<18x8x128xbf16>,
      %cst_47 = arith.constant 0.000000e+00 : bf16
      %71 = vector.broadcast %cst_47 : bf16 to vector<1x16x128xbf16>
      %c0_48 = arith.constant 0 : index
      %c8_49 = arith.constant 8 : index
      %c0_50 = arith.constant 0 : index
      %72 = vector.load %arg10[%c0_48, %c8_49, %c0_50] : memref<18x32x128xbf16, #tpu.memory_space<vmem>>, vector<1x16x128xbf16>
      tpu.vector_store %arg10[%c0_48, %c8_49, %c0_50], %71 {strides = array<i32>} : memref<18x32x128xbf16, #tpu.memory_space<vmem>>, vector<1x16x128xbf16>,
      %cst_51 = arith.constant 0.000000e+00 : bf16
      %73 = vector.broadcast %cst_51 : bf16 to vector<1x16x128xbf16>
      %c17 = arith.constant 17 : index
      %c8_52 = arith.constant 8 : index
      %c0_53 = arith.constant 0 : index
      %74 = vector.load %arg10[%c17, %c8_52, %c0_53] : memref<18x32x128xbf16, #tpu.memory_space<vmem>>, vector<1x16x128xbf16>
      tpu.vector_store %arg10[%c17, %c8_52, %c0_53], %73 {strides = array<i32>} : memref<18x32x128xbf16, #tpu.memory_space<vmem>>, vector<1x16x128xbf16>,
      %c0_54 = arith.constant 0 : index
      %c0_55 = arith.constant 0 : index
      %c0_56 = arith.constant 0 : index
      %c0_57 = arith.constant 0 : index
      %75 = vector.load %arg2[%c0_54, %c0_55, %c0_56, %c0_57] : memref<1x16x16x128xbf16, #tpu.memory_space<vmem>>, vector<1x16x16x128xbf16>
      %76 = vector.shape_cast %75 : vector<1x16x16x128xbf16> to vector<16x16x128xbf16>
      %77 = vector.shape_cast %76 : vector<16x16x128xbf16> to vector<256x128xbf16>
      %c0_58 = arith.constant 0 : index
      %c0_59 = arith.constant 0 : index
      %78 = vector.load %arg3[%c0_58, %c0_59] : memref<128x128xbf16, #tpu.memory_space<vmem>>, vector<128x128xbf16>
      %cst_60 = arith.constant dense<0.000000e+00> : vector<256x128xf32>
      %79 = tpu.matmul %77, %78, %cst_60 {dimension_numbers = #tpu.dot_dimension_numbers<[1], [0], [0], [1], [0, 0, 1, 1], [], []>} : vector<256x128xbf16>, vector<128x128xbf16>, vector<256x128xf32> -> vector<256x128xf32>
      %c0_61 = arith.constant 0 : index
      %c0_62 = arith.constant 0 : index
      %80 = vector.load %arg6[%c0_61, %c0_62] : memref<1x128xf32, #tpu.memory_space<vmem>>, vector<1x128xf32>
      %81 = vector.broadcast %80 : vector<1x128xf32> to vector<256x128xf32>
      %82 = arith.addf %79, %81 : vector<256x128xf32>
      %cst_63 = arith.constant 0.000000e+00 : f32
      %83 = vector.broadcast %cst_63 : f32 to vector<256x128xf32>
      %84 = arith.maximumf %82, %83 : vector<256x128xf32>
      %85 = arith.truncf %84 : vector<256x128xf32> to vector<256x128xbf16>
      %86 = vector.shape_cast %85 : vector<256x128xbf16> to vector<16x16x128xbf16>
      %c1 = arith.constant 1 : index
      %c8_64 = arith.constant 8 : index
      %c0_65 = arith.constant 0 : index
      %87 = vector.load %arg10[%c1, %c8_64, %c0_65] : memref<18x32x128xbf16, #tpu.memory_space<vmem>>, vector<16x16x128xbf16>
      tpu.vector_store %arg10[%c1, %c8_64, %c0_65], %86 {strides = array<i32>} : memref<18x32x128xbf16, #tpu.memory_space<vmem>>, vector<16x16x128xbf16>,
    } else {
    }
    %c8_i32 = arith.constant 8 : i32
    %3 = arith.muli %arg1, %c8_i32 : i32
    %4 = tpu.assume_multiple %3, 8 : i32
    %c0_i32_1 = arith.constant 0 : i32
    %5 = arith.addi %4, %c0_i32_1 : i32
    %6 = arith.index_cast %5 : i32 to index
    %c7 = arith.constant 7 : index
    %c0 = arith.constant 0 : index
    %7 = vector.load %arg10[%6, %c7, %c0] : memref<18x32x128xbf16, #tpu.memory_space<vmem>>, vector<8x16x128xbf16>
    %8 = vector.shape_cast %7 : vector<8x16x128xbf16> to vector<128x128xbf16>
    %c0_i32_2 = arith.constant 0 : i32
    %9 = arith.addi %4, %c0_i32_2 : i32
    %10 = arith.index_cast %9 : i32 to index
    %c8 = arith.constant 8 : index
    %c0_3 = arith.constant 0 : index
    %11 = vector.load %arg10[%10, %c8, %c0_3] : memref<18x32x128xbf16, #tpu.memory_space<vmem>>, vector<8x16x128xbf16>
    %12 = vector.shape_cast %11 : vector<8x16x128xbf16> to vector<128x128xbf16>
    %c0_i32_4 = arith.constant 0 : i32
    %13 = arith.addi %4, %c0_i32_4 : i32
    %14 = arith.index_cast %13 : i32 to index
    %c9 = arith.constant 9 : index
    %c0_5 = arith.constant 0 : index
    %15 = vector.load %arg10[%14, %c9, %c0_5] : memref<18x32x128xbf16, #tpu.memory_space<vmem>>, vector<8x16x128xbf16>
    %16 = vector.shape_cast %15 : vector<8x16x128xbf16> to vector<128x128xbf16>
    %c1_i32 = arith.constant 1 : i32
    %17 = arith.addi %4, %c1_i32 : i32
    %18 = arith.index_cast %17 : i32 to index
    %c7_6 = arith.constant 7 : index
    %c0_7 = arith.constant 0 : index
    %19 = vector.load %arg10[%18, %c7_6, %c0_7] : memref<18x32x128xbf16, #tpu.memory_space<vmem>>, vector<8x16x128xbf16>
    %20 = vector.shape_cast %19 : vector<8x16x128xbf16> to vector<128x128xbf16>
    %c1_i32_8 = arith.constant 1 : i32
    %21 = arith.addi %4, %c1_i32_8 : i32
    %22 = arith.index_cast %21 : i32 to index
    %c8_9 = arith.constant 8 : index
    %c0_10 = arith.constant 0 : index
    %23 = vector.load %arg10[%22, %c8_9, %c0_10] : memref<18x32x128xbf16, #tpu.memory_space<vmem>>, vector<8x16x128xbf16>
    %24 = vector.shape_cast %23 : vector<8x16x128xbf16> to vector<128x128xbf16>
    %c1_i32_11 = arith.constant 1 : i32
    %25 = arith.addi %4, %c1_i32_11 : i32
    %26 = arith.index_cast %25 : i32 to index
    %c9_12 = arith.constant 9 : index
    %c0_13 = arith.constant 0 : index
    %27 = vector.load %arg10[%26, %c9_12, %c0_13] : memref<18x32x128xbf16, #tpu.memory_space<vmem>>, vector<8x16x128xbf16>
    %28 = vector.shape_cast %27 : vector<8x16x128xbf16> to vector<128x128xbf16>
    %c2_i32 = arith.constant 2 : i32
    %29 = arith.addi %4, %c2_i32 : i32
    %30 = arith.index_cast %29 : i32 to index
    %c7_14 = arith.constant 7 : index
    %c0_15 = arith.constant 0 : index
    %31 = vector.load %arg10[%30, %c7_14, %c0_15] : memref<18x32x128xbf16, #tpu.memory_space<vmem>>, vector<8x16x128xbf16>
    %32 = vector.shape_cast %31 : vector<8x16x128xbf16> to vector<128x128xbf16>
    %c2_i32_16 = arith.constant 2 : i32
    %33 = arith.addi %4, %c2_i32_16 : i32
    %34 = arith.index_cast %33 : i32 to index
    %c8_17 = arith.constant 8 : index
    %c0_18 = arith.constant 0 : index
    %35 = vector.load %arg10[%34, %c8_17, %c0_18] : memref<18x32x128xbf16, #tpu.memory_space<vmem>>, vector<8x16x128xbf16>
    %36 = vector.shape_cast %35 : vector<8x16x128xbf16> to vector<128x128xbf16>
    %c2_i32_19 = arith.constant 2 : i32
    %37 = arith.addi %4, %c2_i32_19 : i32
    %38 = arith.index_cast %37 : i32 to index
    %c9_20 = arith.constant 9 : index
    %c0_21 = arith.constant 0 : index
    %39 = vector.load %arg10[%38, %c9_20, %c0_21] : memref<18x32x128xbf16, #tpu.memory_space<vmem>>, vector<8x16x128xbf16>
    %40 = vector.shape_cast %39 : vector<8x16x128xbf16> to vector<128x128xbf16>
    %41 = tpu.concatenate %8, %12, %16, %20, %24, %28, %32, %36, %40 in 1 : vector<128x128xbf16>, vector<128x128xbf16>, vector<128x128xbf16>, vector<128x128xbf16>, vector<128x128xbf16>, vector<128x128xbf16>, vector<128x128xbf16>, vector<128x128xbf16>, vector<128x128xbf16> -> vector<128x1152xbf16>
    %c0_22 = arith.constant 0 : index
    %c0_23 = arith.constant 0 : index
    %42 = vector.load %arg4[%c0_22, %c0_23] : memref<1152x128xbf16, #tpu.memory_space<vmem>>, vector<1152x128xbf16>
    %cst = arith.constant dense<0.000000e+00> : vector<128x128xf32>
    %43 = tpu.matmul %41, %42, %cst {dimension_numbers = #tpu.dot_dimension_numbers<[1], [0], [0], [1], [0, 0, 1, 1], [], []>} : vector<128x1152xbf16>, vector<1152x128xbf16>, vector<128x128xf32> -> vector<128x128xf32>
    %c0_24 = arith.constant 0 : index
    %c0_25 = arith.constant 0 : index
    %44 = vector.load %arg7[%c0_24, %c0_25] : memref<1x128xf32, #tpu.memory_space<vmem>>, vector<1x128xf32>
    %45 = vector.broadcast %44 : vector<1x128xf32> to vector<128x128xf32>
    %46 = arith.addf %43, %45 : vector<128x128xf32>
    %cst_26 = arith.constant 0.000000e+00 : f32
    %47 = vector.broadcast %cst_26 : f32 to vector<128x128xf32>
    %48 = arith.maximumf %46, %47 : vector<128x128xf32>
    %49 = arith.truncf %48 : vector<128x128xf32> to vector<128x128xbf16>
    %c0_27 = arith.constant 0 : index
    %c0_28 = arith.constant 0 : index
    %50 = vector.load %arg5[%c0_27, %c0_28] : memref<128x128xbf16, #tpu.memory_space<vmem>>, vector<128x128xbf16>
    %cst_29 = arith.constant dense<0.000000e+00> : vector<128x128xf32>
    %51 = tpu.matmul %49, %50, %cst_29 {dimension_numbers = #tpu.dot_dimension_numbers<[1], [0], [0], [1], [0, 0, 1, 1], [], []>} : vector<128x128xbf16>, vector<128x128xbf16>, vector<128x128xf32> -> vector<128x128xf32>
    %c0_30 = arith.constant 0 : index
    %c0_31 = arith.constant 0 : index
    %52 = vector.load %arg8[%c0_30, %c0_31] : memref<1x128xf32, #tpu.memory_space<vmem>>, vector<1x128xf32>
    %53 = vector.broadcast %52 : vector<1x128xf32> to vector<128x128xf32>
    %54 = arith.addf %51, %53 : vector<128x128xf32>
    %c0_32 = arith.constant 0 : index
    %55 = arith.index_cast %4 : i32 to index
    %c0_33 = arith.constant 0 : index
    %c0_34 = arith.constant 0 : index
    %56 = vector.load %arg2[%c0_32, %55, %c0_33, %c0_34] : memref<1x16x16x128xbf16, #tpu.memory_space<vmem>>, vector<1x8x16x128xbf16>
    %57 = vector.shape_cast %56 : vector<1x8x16x128xbf16> to vector<8x16x128xbf16>
    %58 = vector.shape_cast %57 : vector<8x16x128xbf16> to vector<128x128xbf16>
    %59 = arith.extf %58 : vector<128x128xbf16> to vector<128x128xf32>
    %60 = arith.addf %54, %59 : vector<128x128xf32>
    %cst_35 = arith.constant 0.000000e+00 : f32
    %61 = vector.broadcast %cst_35 : f32 to vector<128x128xf32>
    %62 = arith.maximumf %60, %61 : vector<128x128xf32>
    %63 = vector.shape_cast %62 : vector<128x128xf32> to vector<8x16x128xf32>
    %c0_36 = arith.constant 0 : index
    %c0_37 = arith.constant 0 : index
    %c0_38 = arith.constant 0 : index
    %c0_39 = arith.constant 0 : index
    %64 = vector.load %arg9[%c0_36, %c0_37, %c0_38, %c0_39] : memref<1x8x16x128xf32, #tpu.memory_space<vmem>>, vector<1x8x16x128xf32>
    %65 = vector.shape_cast %64 : vector<1x8x16x128xf32> to vector<8x16x128xf32>
    %66 = vector.shape_cast %63 : vector<8x16x128xf32> to vector<1x8x16x128xf32>
    tpu.vector_store %arg9[%c0_36, %c0_37, %c0_38, %c0_39], %66 {strides = array<i32>} : memref<1x8x16x128xf32, #tpu.memory_space<vmem>>, vector<1x8x16x128xf32>,
    return
  }
  func.func @transform_0(%arg0: i32, %arg1: i32) -> (i32, i32, i32, i32) {
    %c0_i32 = arith.constant 0 : i32
    %c0_i32_0 = arith.constant 0 : i32
    %c0_i32_1 = arith.constant 0 : i32
    %c0_i32_2 = arith.constant 0 : i32
    return %arg0, %c0_i32, %c0_i32_0, %c0_i32_1 : i32, i32, i32, i32
  }
  func.func @transform_1(%arg0: i32, %arg1: i32) -> (i32, i32) {
    %c0_i32 = arith.constant 0 : i32
    %c0_i32_0 = arith.constant 0 : i32
    %c0_i32_1 = arith.constant 0 : i32
    return %c0_i32, %c0_i32_0 : i32, i32
  }
  func.func @transform_2(%arg0: i32, %arg1: i32) -> (i32, i32) {
    %c0_i32 = arith.constant 0 : i32
    %c0_i32_0 = arith.constant 0 : i32
    %c0_i32_1 = arith.constant 0 : i32
    return %c0_i32, %c0_i32_0 : i32, i32
  }
  func.func @transform_3(%arg0: i32, %arg1: i32) -> (i32, i32) {
    %c0_i32 = arith.constant 0 : i32
    %c0_i32_0 = arith.constant 0 : i32
    %c0_i32_1 = arith.constant 0 : i32
    return %c0_i32, %c0_i32_0 : i32, i32
  }
  func.func @transform_4(%arg0: i32, %arg1: i32) -> (i32, i32) {
    %c0_i32 = arith.constant 0 : i32
    %c0_i32_0 = arith.constant 0 : i32
    %c0_i32_1 = arith.constant 0 : i32
    return %c0_i32, %c0_i32_0 : i32, i32
  }
  func.func @transform_5(%arg0: i32, %arg1: i32) -> (i32, i32) {
    %c0_i32 = arith.constant 0 : i32
    %c0_i32_0 = arith.constant 0 : i32
    %c0_i32_1 = arith.constant 0 : i32
    return %c0_i32, %c0_i32_0 : i32, i32
  }
  func.func @transform_6(%arg0: i32, %arg1: i32) -> (i32, i32) {
    %c0_i32 = arith.constant 0 : i32
    %c0_i32_0 = arith.constant 0 : i32
    %c0_i32_1 = arith.constant 0 : i32
    return %c0_i32, %c0_i32_0 : i32, i32
  }
  func.func @transform_7(%arg0: i32, %arg1: i32) -> (i32, i32, i32, i32) {
    %c0_i32 = arith.constant 0 : i32
    %c0_i32_0 = arith.constant 0 : i32
    %c0_i32_1 = arith.constant 0 : i32
    return %arg0, %arg1, %c0_i32, %c0_i32_0 : i32, i32, i32, i32
  }
}

</mosaic_0001>

<bundles_post_ra>
// kernel: bottleneck_forward.1
= control target key start
LH: loop header
LB: loop body
LE: loop exit
PB: predicated region body
PF: predicated region fallthrough
CT: control target
= control target key end

     0   :  { %s5299_s0 = inlined_call_operand.vmem [shape: bf16[2,16,16,128], index: 0, kind: input, shape index: {}]   ;;  %s5300_s1 = inlined_call_operand.vmem [shape: bf16[128,128], index: 1, kind: input, shape index: {}]   ;;  %s5301_s2 = inlined_call_operand.vmem [shape: bf16[1152,128], index: 2, kind: input, shape index: {}]   ;;  %s5302_s3 = inlined_call_operand.vmem [shape: bf16[128,128], index: 3, kind: input, shape index: {}]   ;;  %s5303_s4 = inlined_call_operand.vmem [shape: f32[1,128], index: 4, kind: input, shape index: {}]   ;;  %s5304_s5 = inlined_call_operand.vmem [shape: f32[1,128], index: 5, kind: input, shape index: {}]   ;;  %s5305_s6 = inlined_call_operand.vmem [shape: f32[1,128], index: 6, kind: input, shape index: {}]   ;;  %s5306_s7 = inlined_call_operand.hbm [shape: f32[2,16,16,128], index: 7, kind: output, shape index: {}]  }
   0x1   :  { %5309 = sst [smem:[#allocation7_spill]] %s5299_s0 }
   0x2   :  { %5310 = sst [smem:[#allocation8_spill]] %s5300_s1 }
   0x3   :  { %12 = vsyncpa [#allocation4], 0 }
   0x4   :  { %14 = vsyncpa [#allocation4 + $0x1], 0  ;;  %s4392_s24 = smov 0   ;;  %s4394_s25 = smov 0  }
   0x5   :  { %s4396_s26 = smov 0   ;;  %s4398_s27 = smov 0  }
   0x6   :  { %s4400_s28 = smov 0   ;;  %s4402_s29 = smov 0  }
   0x7   :  { %s4404_s30 = smov 0   ;;  %s4406_s8 = smov 0  }
   0x8 LB: > { %s3393_s9 = sadd.s32 4294967295, %s4346_s8   ;;  %s3394_s10 = sadd.s32 4294967294, %s4346_s8   ;;  %s4346_s8 = sphi %s4406_s8, %s20_s8   ;;  %s4342_s30 = sphi %s4404_s30, %s5324_s30   ;;  %s4338_s29 = sphi %s4402_s29, %s5323_s29   ;;  %s4334_s28 = sphi %s4400_s28, %s5322_s28   ;;  %s4330_s27 = sphi %s4398_s27, %s5321_s27   ;;  %s4326_s26 = sphi %s4396_s26, %s5320_s26   ;;  %s4322_s25 = sphi %s4394_s25, %s5319_s25   ;;  %s4318_s24 = sphi %s4392_s24, %s5318_s24  }
   0x9   : > { %s29_s11 = sadd.s32 1, %s4338_s29  ;;  %s32_s12 = sadd.s32 1, %s4342_s30 }
   0xa   : > { %p30_p0 = scmp.ge.s32.totalorder %s29_s11, 2  ;;  %p203_p1 = scmp.ne.s32.totalorder %s4326_s26, %s4322_s25 }
   0xb   : > { %p204_p2 = scmp.eq.s32.totalorder %s3393_s9, 3  ;;  %p209_p5 = scmp.ne.s32.totalorder %s4322_s25, %s4318_s24 }
   0xc   : > { %s5326_s11 = smov (%p30_p0, %s29_s11), 0  ;;  %s5328_s12 = smov (!%p30_p0, %s32_s12), %s4342_s30 }
   0xd   : > { %s189_s13 = ssub.s32 %s4338_s29, %s5326_s11  ;;  %p4443_p3 = por %p204_p2, %p203_p1 }
   0xe   : > { %p34_p4 = scmp.ge.s32.totalorder %s5328_s12, 2  ;;  %p210_p6 = scmp.eq.s32.totalorder %s3394_s10, 3 }
   0xf   : > { %p3397_p7 = scmp.ge.s32.totalorder %s4346_s8, 1  ;;  %p254_p9 = scmp.lt.s32.totalorder %s4346_s8, 5 }
  0x10   : > { %s5330_s12 = smov (%p34_p4, %s5328_s12), 0  ;;  %p4452_p8 = por %p210_p6, %p209_p5 }
  0x11   : > { %5312 = sst [smem:[#allocation6_spill]] %s5330_s12  ;;  %s188_s16 = ssub.s32 %s4342_s30, %s5330_s12 }
  0x12   : > { %s193_s17 = sadd.s32 1, %s4326_s26  ;;  %s190_s18 = sor.u32 %s189_s13, %s188_s16 }
  0x13   : > { %p255_p10 = pnand %p3397_p7, %p254_p9  ;;  %p191_p11 = scmp.eq.s32.totalorder %s190_s18, 0 }
  0x14   : > { %s5308_s20 = sand.u32 (!%p255_p10), 1, %s4322_s25   ;;  %p286_p12 = scmp.lt.s32.totalorder (!%p255_p10), %s4334_s28, 1 }
  0x15   : > { %s4461_s19 = scalar_select %p191_p11, %s4326_s26, %s193_s17  }
  0x16   : > { %258 = sbr.rel (%p255_p10) target bundleno = 960 (0x3c0), region = 48  ;;  %s3398_s21 = sshll.u32 (!%p255_p10), %s5308_s20, 7 }
  0x17   : > { %s5314_s0 = sld [smem:[#allocation7_spill]] (!%p255_p10)  ;;  %s4473_s13 = scalar_lea.vmem (!%p255_p10), [#allocation3], %s3398_s21 }
  0x18   : > { %p3401_p13 = scmp.ne.s32.totalorder (!%p255_p10), %s4330_s27, 0 }
  0x1d   : > { %s287_s22 = scalar_select %p286_p12, %s4334_s28, 1 }
  0x1e   : > { %296 = sbr.rel (%p3401_p13) target bundleno = 317 (0x13d), region = 52  ;;  %s5315_s1 = sld [smem:[#allocation8_spill]] (!%p3401_p13)  ;;  %v4348_v1 = vmov (!%p3401_p13), 0   ;;  %v4519_v25 = vld [vmem:[%s5303_s4] ss:$0 sm:$0xff] (!%p3401_p13) }
  0x1f   : > { %s3588_s23 = sshll.u32 %s287_s22, 7  ;;  %297 = vst [vmem:[#allocation2] sm:$0xf] (!%p3401_p13), %v4348_v1  ;;  %298 = vst [vmem:[#allocation2 + $0x10] sm:$0xf] (!%p3401_p13), %v4348_v1 }
  0x20   : > { %s4471_s12 = scalar_lea.vmem %s5314_s0, %s3588_s23  ;;  %299 = vst [vmem:[#allocation2 + $0x20] sm:$0xf] (!%p3401_p13), %v4348_v1  ;;  %300 = vst [vmem:[#allocation2 + $0x30] sm:$0xf] (!%p3401_p13), %v4348_v1 }
  0x21   : > { %301 = vst [vmem:[#allocation2 + $0x40] sm:$0xf] (!%p3401_p13), %v4348_v1  ;;  %302 = vst [vmem:[#allocation2 + $0x50] sm:$0xf] (!%p3401_p13), %v4348_v1  ;;  %v4156_v5 = vld [vmem:[%s4471_s12] sm:$0xff] (!%p3401_p13)   ;;  %v4158_v11 = vld [vmem:[%s4471_s12 + $0x8] sm:$0xff] (!%p3401_p13)  }
  0x22   : > { %303 = vst [vmem:[#allocation2 + $0x60] sm:$0xf] (!%p3401_p13), %v4348_v1  ;;  %304 = vst [vmem:[#allocation2 + $0x70] sm:$0xf] (!%p3401_p13), %v4348_v1  ;;  %v4157_v6 = vld [vmem:[%s4471_s12 + $0x40] sm:$0xff] (!%p3401_p13)   ;;  %3962 = vmatprep.mubr.bf16.mxu0 (!%p3401_p13), %v4156_v5  ;;  %v4159_v12 = vld [vmem:[%s4471_s12 + $0x48] sm:$0xff] (!%p3401_p13)  }
  0x23   : > { %305 = vst [vmem:[#allocation2 + $0x80] sm:$0xf] (!%p3401_p13), %v4348_v1  ;;  %306 = vst [vmem:[#allocation2 + $0x90] sm:$0xf] (!%p3401_p13), %v4348_v1  ;;  %3978 = vmatprep.mubr.bf16.mxu1 (!%p3401_p13), %v4157_v6  ;;  %v4160_v13 = vld [vmem:[%s4471_s12 + $0x10] sm:$0xff] (!%p3401_p13)   ;;  %v4162_v15 = vld [vmem:[%s4471_s12 + $0x18] sm:$0xff] (!%p3401_p13)  }
  0x24   : > { %v4148_v0 = vld [vmem:[%s5315_s1] sm:$0xff] (!%p3401_p13)   ;;  %307 = vst [vmem:[#allocation2 + $0xa0] sm:$0xf] (!%p3401_p13), %v4348_v1  ;;  %308 = vst [vmem:[#allocation2 + $0xb0] sm:$0xf] (!%p3401_p13), %v4348_v1  ;;  %v4149_v2 = vld [vmem:[%s5315_s1 + $0x8] sm:$0xff] (!%p3401_p13)  }
  0x25   : > { %309 = vst [vmem:[#allocation2 + $0xc0] sm:$0xf] %v4348_v1  ;;  %310 = vst [vmem:[#allocation2 + $0xd0] sm:$0xf] %v4348_v1  ;;  %3946 = vmatprep.subr.bf16.mxu0 %v4148_v0  ;;  %4058 = vmatprep.subr.bf16.mxu1 %v4148_v0  ;;  %v4150_v3 = vld [vmem:[%s5315_s1 + $0x10] sm:$0xff]   ;;  %v4151_v4 = vld [vmem:[%s5315_s1 + $0x18] sm:$0xff]  }
  0x26   : > { %311 = vst [vmem:[#allocation2 + $0xe0] sm:$0xf] %v4348_v1  ;;  %312 = vst [vmem:[#allocation2 + $0xf0] sm:$0xf] %v4348_v1  ;;  %3947 = vmatpush3.bf16.msra.mxu0 %v4148_v0  ;;  %4066 = vmatpush3.bf16.msra.mxu1 %v4148_v0  ;;  %v4152_v7 = vld [vmem:[%s5315_s1 + $0x20] sm:$0xff]   ;;  %v4153_v8 = vld [vmem:[%s5315_s1 + $0x28] sm:$0xff]  }
  0x27   : > { %313 = vst [vmem:[#allocation2 + $0x100] sm:$0xf] %v4348_v1  ;;  %314 = vst [vmem:[#allocation2 + $0x110] sm:$0xf] %v4348_v1  ;;  %3948 = vmatprep.subr.bf16.mxu0 %v4149_v2  ;;  %4059 = vmatprep.subr.bf16.mxu1 %v4149_v2  ;;  %v4154_v9 = vld [vmem:[%s5315_s1 + $0x30] sm:$0xff]   ;;  %v4155_v10 = vld [vmem:[%s5315_s1 + $0x38] sm:$0xff]  }
  0x28   : > { %315 = vst [vmem:[#allocation2 + $0x8] sm:$0xf0] %v4348_v1  ;;  %316 = vst [vmem:[#allocation2 + $0x18] sm:$0xf0] %v4348_v1  ;;  %v4161_v14 = vld [vmem:[%s4471_s12 + $0x50] sm:$0xff]   ;;  %v4163_v16 = vld [vmem:[%s4471_s12 + $0x58] sm:$0xff]  }
  0x29   : > { %317 = vst [vmem:[#allocation2 + $0x28] sm:$0xf0] %v4348_v1  ;;  %318 = vst [vmem:[#allocation2 + $0x38] sm:$0xf0] %v4348_v1  ;;  %v4164_v17 = vld [vmem:[%s4471_s12 + $0x20] sm:$0xff]   ;;  %v4166_v19 = vld [vmem:[%s4471_s12 + $0x28] sm:$0xff]  }
  0x2a   : > { %319 = vst [vmem:[#allocation2 + $0x48] sm:$0xf0] %v4348_v1  ;;  %320 = vst [vmem:[#allocation2 + $0x58] sm:$0xf0] %v4348_v1  ;;  %3949 = vmatpush3.bf16.msra.mxu0 %v4149_v2  ;;  %4067 = vmatpush3.bf16.msra.mxu1 %v4149_v2  ;;  %v4165_v18 = vld [vmem:[%s4471_s12 + $0x60] sm:$0xff]   ;;  %v4167_v20 = vld [vmem:[%s4471_s12 + $0x68] sm:$0xff]  }
  0x2b   : > { %321 = vst [vmem:[#allocation2 + $0x68] sm:$0xf0] %v4348_v1  ;;  %322 = vst [vmem:[#allocation2 + $0x78] sm:$0xf0] %v4348_v1  ;;  %3950 = vmatprep.subr.bf16.mxu0 %v4150_v3  ;;  %4060 = vmatprep.subr.bf16.mxu1 %v4150_v3  ;;  %v4168_v21 = vld [vmem:[%s4471_s12 + $0x30] sm:$0xff]   ;;  %v4170_v23 = vld [vmem:[%s4471_s12 + $0x38] sm:$0xff]  }
  0x2c   : > { %323 = vst [vmem:[#allocation2 + $0x88] sm:$0xf0] %v4348_v1  ;;  %324 = vst [vmem:[#allocation2 + $0x98] sm:$0xf0] %v4348_v1  ;;  %v4169_v22 = vld [vmem:[%s4471_s12 + $0x70] sm:$0xff]   ;;  %v4171_v24 = vld [vmem:[%s4471_s12 + $0x78] sm:$0xff]  }
  0x2d   : > { %325 = vst [vmem:[#allocation2 + $0xa8] sm:$0xf0] %v4348_v1  ;;  %326 = vst [vmem:[#allocation2 + $0xb8] sm:$0xf0] %v4348_v1 }
  0x2e   : > { %327 = vst [vmem:[#allocation2 + $0xc8] sm:$0xf0] %v4348_v1  ;;  %328 = vst [vmem:[#allocation2 + $0xd8] sm:$0xf0] %v4348_v1  ;;  %3951 = vmatpush3.bf16.msra.mxu0 %v4150_v3  ;;  %4068 = vmatpush3.bf16.msra.mxu1 %v4150_v3 }
  0x2f   : > { %329 = vst [vmem:[#allocation2 + $0xe8] sm:$0xf0] %v4348_v1  ;;  %330 = vst [vmem:[#allocation2 + $0xf8] sm:$0xf0] %v4348_v1  ;;  %3952 = vmatprep.subr.bf16.mxu0 %v4151_v4  ;;  %4061 = vmatprep.subr.bf16.mxu1 %v4151_v4 }
  0x30   : > { %331 = vst [vmem:[#allocation2 + $0x108] sm:$0xf0] %v4348_v1  ;;  %332 = vst [vmem:[#allocation2 + $0x118] sm:$0xf0] %v4348_v1 }
  0x31   : > { %333 = vst [vmem:[#allocation2] sm:$0xf0] %v4348_v1  ;;  %334 = vst [vmem:[#allocation2 + $0x8] sm:$0xf] %v4348_v1 }
  0x32   : > { %336 = vst [vmem:[#allocation2 + $0x110] sm:$0xf0] %v4348_v1  ;;  %337 = vst [vmem:[#allocation2 + $0x118] sm:$0xf] %v4348_v1  ;;  %3953 = vmatpush3.bf16.msra.mxu0 %v4151_v4  ;;  %4069 = vmatpush3.bf16.msra.mxu1 %v4151_v4 }
  0x33   : > { %3954 = vmatprep.subr.bf16.mxu0 %v4152_v7  ;;  %4062 = vmatprep.subr.bf16.mxu1 %v4152_v7 }
  0x36   : > { %3955 = vmatpush3.bf16.msra.mxu0 %v4152_v7  ;;  %4070 = vmatpush3.bf16.msra.mxu1 %v4152_v7 }
  0x37   : > { %3956 = vmatprep.subr.bf16.mxu0 %v4153_v8  ;;  %4063 = vmatprep.subr.bf16.mxu1 %v4153_v8 }
  0x3a   : > { %3957 = vmatpush3.bf16.msra.mxu0 %v4153_v8  ;;  %4071 = vmatpush3.bf16.msra.mxu1 %v4153_v8 }
  0x3b   : > { %3958 = vmatprep.subr.bf16.mxu0 %v4154_v9  ;;  %4064 = vmatprep.subr.bf16.mxu1 %v4154_v9 }
  0x3e   : > { %3959 = vmatpush3.bf16.msra.mxu0 %v4154_v9  ;;  %4072 = vmatpush3.bf16.msra.mxu1 %v4154_v9 }
  0x3f   : > { %3960 = vmatprep.subr.bf16.mxu0 %v4155_v10  ;;  %4065 = vmatprep.subr.bf16.mxu1 %v4155_v10 }
  0x42   : > { %3961 = vmatpush3.bf16.msra.mxu0 %v4155_v10  ;;  %4073 = vmatpush3.bf16.msra.mxu1 %v4155_v10 }
  0x45   : > { %3963 = vmatmul.mubr.bf16.vlgmr.msra.gmra.mrb[0].mxu0 %v4158_v11  ;;  %3979 = vmatmul.mubr.bf16.vlgmr.msra.gmra.mrb[0].mxu1 %v4159_v12 }
  0x46   : > { %3966 = vmatprep.mubr.bf16.mxu0 %v4160_v13  ;;  %3982 = vmatprep.mubr.bf16.mxu1 %v4161_v14 }
  0x4d   : > { %3967 = vmatmul.mubr.bf16.gmra.mrb[4].mxu0 %v4162_v15  ;;  %3983 = vmatmul.mubr.bf16.gmra.mrb[4].mxu1 %v4163_v16 }
  0x4e   : > { %3970 = vmatprep.mubr.bf16.mxu0 %v4164_v17  ;;  %3986 = vmatprep.mubr.bf16.mxu1 %v4165_v18 }
  0x55   : > { %3971 = vmatmul.mubr.bf16.gmra.mrb[8].mxu0 %v4166_v19  ;;  %3987 = vmatmul.mubr.bf16.gmra.mrb[8].mxu1 %v4167_v20 }
  0x56   : > { %3974 = vmatprep.mubr.bf16.mxu0 %v4168_v21  ;;  %3990 = vmatprep.mubr.bf16.mxu1 %v4169_v22 }
  0x5d   : > { %3975 = vmatmul.mubr.bf16.gmra.mrb[12].mxu0 %v4170_v23  ;;  %3991 = vmatmul.mubr.bf16.gmra.mrb[12].mxu1 %v4171_v24 }
 0x118   : > { %v3964_v26 = vpop.f32.mrb[0].mxu0  ;;  %v3980_v27 = vpop.f32.mrb[0].mxu1 }
 0x119   : > { %v580_v28 = vadd.f32 %v3964_v26, %v4519_v25  ;;  %v644_v29 = vadd.f32 %v3980_v27, %v4519_v25  ;;  %v571_v30 = vpop.f32.mrb[1].mxu0  ;;  %v635_v31 = vpop.f32.mrb[1].mxu1 }
 0x11a   : > { %v572_v32 = vadd.f32 %v4519_v25, %v571_v30  ;;  %v636_v33 = vadd.f32 %v4519_v25, %v635_v31  ;;  %v3965_v34 = vpop.f32.mrb[2].mxu0  ;;  %v3981_v35 = vpop.f32.mrb[2].mxu1 }
 0x11b   : > { %v583_v36 = vadd.f32 %v3965_v34, %v4519_v25  ;;  %v647_v37 = vadd.f32 %v3981_v35, %v4519_v25  ;;  %v574_v38 = vpop.f32.mrb[3].mxu0  ;;  %v638_v39 = vpop.f32.mrb[3].mxu1  ;;  %v700_v42 = vmax.f32 %v580_v28, 0.0  ;;  %v716_v43 = vmax.f32 %v644_v29, 0.0 }
 0x11c   : > { %v575_v40 = vadd.f32 %v4519_v25, %v574_v38  ;;  %v639_v41 = vadd.f32 %v4519_v25, %v638_v39  ;;  %v698_v46 = vmax.f32 %v572_v32, 0.0  ;;  %v714_v47 = vmax.f32 %v636_v33, 0.0 }
 0x11d   : > { %v701_v44 = vmax.f32 %v583_v36, 0.0  ;;  %v717_v45 = vmax.f32 %v647_v37, 0.0 }
 0x11e   : > { %v699_v48 = vmax.f32 %v575_v40, 0.0  ;;  %v715_v49 = vmax.f32 %v639_v41, 0.0 }
 0x11f   : > { %v731_v50 = vpack.c.bf16 %v701_v44, %v700_v42  ;;  %v739_v51 = vpack.c.bf16 %v717_v45, %v716_v43 }
 0x120   : > { %v730_v52 = vpack.c.bf16 %v699_v48, %v698_v46  ;;  %v738_v53 = vpack.c.bf16 %v715_v49, %v714_v47  ;;  %v3968_v54 = vpop.f32.mrb[4].mxu0  ;;  %v3984_v55 = vpop.f32.mrb[4].mxu1 }
 0x121   : > { %v763_v56 = vrot.slane %v731_v50, 4  ;;  %v771_v57 = vrot.slane %v739_v51, 4  ;;  %v596_v58 = vadd.f32 %v3968_v54, %v4519_v25  ;;  %v660_v59 = vadd.f32 %v3984_v55, %v4519_v25  ;;  %v587_v60 = vpop.f32.mrb[5].mxu0  ;;  %v651_v61 = vpop.f32.mrb[5].mxu1 }
 0x122   : > { %v762_v62 = vrot.slane %v730_v52, 4  ;;  %v770_v63 = vrot.slane %v738_v53, 4  ;;  %v588_v0 = vadd.f32 %v4519_v25, %v587_v60  ;;  %v652_v1 = vadd.f32 %v4519_v25, %v651_v61  ;;  %v3969_v2 = vpop.f32.mrb[6].mxu0  ;;  %v3985_v3 = vpop.f32.mrb[6].mxu1 }
 0x123   : > { %797 = vst [vmem:[#allocation2 + $0x28] ss:$-4 sps:$4 sm:$0xff] %v763_v56   ;;  %813 = vst [vmem:[#allocation2 + $0xa8] ss:$-4 sps:$4 sm:$0xff] %v771_v57   ;;  %v599_v4 = vadd.f32 %v3969_v2, %v4519_v25  ;;  %v663_v5 = vadd.f32 %v3985_v3, %v4519_v25  ;;  %v590_v6 = vpop.f32.mrb[7].mxu0  ;;  %v654_v7 = vpop.f32.mrb[7].mxu1 }
 0x124   : > { %795 = vst [vmem:[#allocation2 + $0x18] ss:$-4 sps:$4 sm:$0xff] %v762_v62   ;;  %811 = vst [vmem:[#allocation2 + $0x98] ss:$-4 sps:$4 sm:$0xff] %v770_v63   ;;  %v591_v8 = vadd.f32 %v4519_v25, %v590_v6  ;;  %v655_v9 = vadd.f32 %v4519_v25, %v654_v7  ;;  %v704_v10 = vmax.f32 %v596_v58, 0.0  ;;  %v720_v11 = vmax.f32 %v660_v59, 0.0 }
 0x125   : > { %v705_v12 = vmax.f32 %v599_v4, 0.0  ;;  %v721_v13 = vmax.f32 %v663_v5, 0.0  ;;  %v702_v14 = vmax.f32 %v588_v0, 0.0  ;;  %v718_v15 = vmax.f32 %v652_v1, 0.0 }
 0x126   : > { %v703_v16 = vmax.f32 %v591_v8, 0.0  ;;  %v719_v17 = vmax.f32 %v655_v9, 0.0 }
 0x127   : > { %v733_v18 = vpack.c.bf16 %v705_v12, %v704_v10  ;;  %v741_v19 = vpack.c.bf16 %v721_v13, %v720_v11 }
 0x128   : > { %v732_v20 = vpack.c.bf16 %v703_v16, %v702_v14  ;;  %v740_v21 = vpack.c.bf16 %v719_v17, %v718_v15  ;;  %v3972_v22 = vpop.f32.mrb[8].mxu0  ;;  %v3988_v23 = vpop.f32.mrb[8].mxu1 }
 0x129   : > { %v765_v24 = vrot.slane %v733_v18, 4  ;;  %v773_v26 = vrot.slane %v741_v19, 4  ;;  %v612_v27 = vadd.f32 %v3972_v22, %v4519_v25  ;;  %v676_v28 = vadd.f32 %v3988_v23, %v4519_v25  ;;  %v603_v29 = vpop.f32.mrb[9].mxu0  ;;  %v667_v30 = vpop.f32.mrb[9].mxu1 }
 0x12a   : > { %v764_v31 = vrot.slane %v732_v20, 4  ;;  %v772_v32 = vrot.slane %v740_v21, 4  ;;  %v604_v33 = vadd.f32 %v4519_v25, %v603_v29  ;;  %v668_v34 = vadd.f32 %v4519_v25, %v667_v30  ;;  %v3973_v35 = vpop.f32.mrb[10].mxu0  ;;  %v3989_v36 = vpop.f32.mrb[10].mxu1 }
 0x12b   : > { %801 = vst [vmem:[#allocation2 + $0x48] ss:$-4 sps:$4 sm:$0xff] %v765_v24   ;;  %817 = vst [vmem:[#allocation2 + $0xc8] ss:$-4 sps:$4 sm:$0xff] %v773_v26   ;;  %v615_v37 = vadd.f32 %v3973_v35, %v4519_v25  ;;  %v679_v38 = vadd.f32 %v3989_v36, %v4519_v25  ;;  %v606_v39 = vpop.f32.mrb[11].mxu0  ;;  %v670_v40 = vpop.f32.mrb[11].mxu1 }
 0x12c   : > { %799 = vst [vmem:[#allocation2 + $0x38] ss:$-4 sps:$4 sm:$0xff] %v764_v31   ;;  %815 = vst [vmem:[#allocation2 + $0xb8] ss:$-4 sps:$4 sm:$0xff] %v772_v32   ;;  %v607_v41 = vadd.f32 %v4519_v25, %v606_v39  ;;  %v671_v42 = vadd.f32 %v4519_v25, %v670_v40  ;;  %v708_v43 = vmax.f32 %v612_v27, 0.0  ;;  %v724_v44 = vmax.f32 %v676_v28, 0.0 }
 0x12d   : > { %v709_v45 = vmax.f32 %v615_v37, 0.0  ;;  %v725_v46 = vmax.f32 %v679_v38, 0.0  ;;  %v706_v47 = vmax.f32 %v604_v33, 0.0  ;;  %v722_v48 = vmax.f32 %v668_v34, 0.0 }
 0x12e   : > { %v707_v49 = vmax.f32 %v607_v41, 0.0  ;;  %v723_v50 = vmax.f32 %v671_v42, 0.0 }
 0x12f   : > { %v735_v51 = vpack.c.bf16 %v709_v45, %v708_v43  ;;  %v743_v52 = vpack.c.bf16 %v725_v46, %v724_v44 }
 0x130   : > { %v734_v53 = vpack.c.bf16 %v707_v49, %v706_v47  ;;  %v742_v54 = vpack.c.bf16 %v723_v50, %v722_v48  ;;  %v3976_v55 = vpop.f32.mrb[12].mxu0  ;;  %v3992_v56 = vpop.f32.mrb[12].mxu1 }
 0x131   : > { %v767_v57 = vrot.slane %v735_v51, 4  ;;  %v775_v58 = vrot.slane %v743_v52, 4  ;;  %v628_v59 = vadd.f32 %v3976_v55, %v4519_v25  ;;  %v692_v60 = vadd.f32 %v3992_v56, %v4519_v25  ;;  %v619_v61 = vpop.f32.mrb[13].mxu0  ;;  %v683_v62 = vpop.f32.mrb[13].mxu1 }
 0x132   : > { %v766_v63 = vrot.slane %v734_v53, 4  ;;  %v774_v0 = vrot.slane %v742_v54, 4  ;;  %v620_v1 = vadd.f32 %v4519_v25, %v619_v61  ;;  %v684_v2 = vadd.f32 %v4519_v25, %v683_v62  ;;  %v3977_v3 = vpop.f32.mrb[14].mxu0  ;;  %v3993_v4 = vpop.f32.mrb[14].mxu1 }
 0x133   : > { %805 = vst [vmem:[#allocation2 + $0x68] ss:$-4 sps:$4 sm:$0xff] %v767_v57   ;;  %821 = vst [vmem:[#allocation2 + $0xe8] ss:$-4 sps:$4 sm:$0xff] %v775_v58   ;;  %v631_v5 = vadd.f32 %v3977_v3, %v4519_v25  ;;  %v695_v6 = vadd.f32 %v3993_v4, %v4519_v25  ;;  %v622_v7 = vpop.f32.mrb[15].mxu0  ;;  %v686_v8 = vpop.f32.mrb[15].mxu1 }
 0x134   : > { %803 = vst [vmem:[#allocation2 + $0x58] ss:$-4 sps:$4 sm:$0xff] %v766_v63   ;;  %819 = vst [vmem:[#allocation2 + $0xd8] ss:$-4 sps:$4 sm:$0xff] %v774_v0   ;;  %v623_v9 = vadd.f32 %v4519_v25, %v622_v7  ;;  %v687_v10 = vadd.f32 %v4519_v25, %v686_v8  ;;  %v712_v11 = vmax.f32 %v628_v59, 0.0  ;;  %v728_v12 = vmax.f32 %v692_v60, 0.0 }
 0x135   : > { %v713_v13 = vmax.f32 %v631_v5, 0.0  ;;  %v729_v14 = vmax.f32 %v695_v6, 0.0  ;;  %v710_v15 = vmax.f32 %v620_v1, 0.0  ;;  %v726_v16 = vmax.f32 %v684_v2, 0.0 }
 0x136   : > { %v711_v17 = vmax.f32 %v623_v9, 0.0  ;;  %v727_v18 = vmax.f32 %v687_v10, 0.0 }
 0x137   : > { %v737_v19 = vpack.c.bf16 %v713_v13, %v712_v11  ;;  %v745_v20 = vpack.c.bf16 %v729_v14, %v728_v12 }
 0x138   : > { %v736_v21 = vpack.c.bf16 %v711_v17, %v710_v15  ;;  %v744_v22 = vpack.c.bf16 %v727_v18, %v726_v16 }
 0x139   : > { %v769_v23 = vrot.slane %v737_v19, 4  ;;  %v777_v24 = vrot.slane %v745_v20, 4 }
 0x13a   : > { %v768_v26 = vrot.slane %v736_v21, 4  ;;  %v776_v27 = vrot.slane %v744_v22, 4 }
 0x13b   : > { %809 = vst [vmem:[#allocation2 + $0x88] ss:$-4 sps:$4 sm:$0xff] %v769_v23   ;;  %825 = vst [vmem:[#allocation2 + $0x108] ss:$-4 sps:$4 sm:$0xff] %v777_v24  }
 0x13c   : > { %807 = vst [vmem:[#allocation2 + $0x78] ss:$-4 sps:$4 sm:$0xff] %v768_v26   ;;  %823 = vst [vmem:[#allocation2 + $0xf8] ss:$-4 sps:$4 sm:$0xff] %v776_v27  }
 0x13d PF: > { %v4172_v25 = vld [vmem:[%s5301_s2 + $0x40] sm:$0xff]   ;;  %v4176_v31 = vld [vmem:[%s5301_s2 + $0x48] sm:$0xff]   ;;  %v4180_v35 = vld [vmem:[%s5301_s2 + $0x50] sm:$0xff]   ;;  %s3590_s22 = sshll.u32 %s4330_s27, 7  ;;  %vm1016_vm0 = vcmask 1043456   ;;  %s3593_s18 = sshll.u32 %s4330_s27, 6 }
 0x13e   : > { %v4173_v28 = vld [vmem:[%s5301_s2] sm:$0xff]   ;;  %3658 = vmatprep.subr.bf16.mxu0 %v4172_v25  ;;  %v4177_v32 = vld [vmem:[%s5301_s2 + $0x8] sm:$0xff]   ;;  %v4181_v36 = vld [vmem:[%s5301_s2 + $0x10] sm:$0xff]   ;;  %s4647_s23 = scalar_lea.vmem [#allocation2], %s3590_s22  ;;  %vm847_vm1 = vsmask.f32 4352  ;;  %s5188_s21 = scalar_lea.vmem %s4471_s12, %s3593_s18 }
 0x13f   : > { %v4174_v29 = vld [vmem:[%s5301_s2 + $0xc0] sm:$0xff]   ;;  %3659 = vmatpush3.bf16.msra.mxu0 %v4173_v28  ;;  %v4178_v33 = vld [vmem:[%s5301_s2 + $0xc8] sm:$0xff]   ;;  %v4182_v37 = vld [vmem:[%s5301_s2 + $0xd0] sm:$0xff]   ;;  %vm1057_vm2 = vsmask.f32 3328  ;;  %s3594_s12 = sshll.u32 %s4330_s27, 4 }
 0x140   : > { %v4175_v30 = vld [vmem:[%s5301_s2 + $0x80] sm:$0xff]   ;;  %3722 = vmatprep.subr.bf16.mxu1 %v4174_v29  ;;  %3660 = vmatprep.subr.bf16.mxu0 %v4176_v31  ;;  %v4179_v34 = vld [vmem:[%s5301_s2 + $0x88] sm:$0xff]   ;;  %v4183_v38 = vld [vmem:[%s5301_s2 + $0x90] sm:$0xff]   ;;  %s5316_s0 = sand.u32 1, %s4322_s25  }
 0x141   : > { %3723 = vmatpush3.bf16.msra.mxu1 %v4175_v30  ;;  %v4184_v39 = vld [vmem:[%s5301_s2 + $0x58] sm:$0xff]   ;;  %v4188_v43 = vld [vmem:[%s5301_s2 + $0x60] sm:$0xff]   ;;  %v4192_v47 = vld [vmem:[%s5301_s2 + $0x68] sm:$0xff]   ;;  %s5247_s20 = scalar_lea.sflag [#allocation4], %s5316_s0 }
 0x142   : > { %3724 = vmatprep.subr.bf16.mxu1 %v4178_v33  ;;  %v4185_v40 = vld [vmem:[%s5301_s2 + $0x18] sm:$0xff]   ;;  %v4189_v44 = vld [vmem:[%s5301_s2 + $0x20] sm:$0xff]   ;;  %v4193_v48 = vld [vmem:[%s5301_s2 + $0x28] sm:$0xff]  }
 0x143   : > { %3661 = vmatpush3.bf16.msra.mxu0 %v4177_v32  ;;  %v4186_v41 = vld [vmem:[%s5301_s2 + $0xd8] sm:$0xff]   ;;  %v4190_v45 = vld [vmem:[%s5301_s2 + $0xe0] sm:$0xff]   ;;  %v4194_v49 = vld [vmem:[%s5301_s2 + $0xe8] sm:$0xff]  }
 0x144   : > { %3662 = vmatprep.subr.bf16.mxu0 %v4180_v35  ;;  %v4187_v42 = vld [vmem:[%s5301_s2 + $0x98] sm:$0xff]   ;;  %v4191_v46 = vld [vmem:[%s5301_s2 + $0xa0] sm:$0xff]   ;;  %v4195_v50 = vld [vmem:[%s5301_s2 + $0xa8] sm:$0xff]  }
 0x145   : > { %3725 = vmatpush3.bf16.msra.mxu1 %v4179_v34  ;;  %v4196_v51 = vld [vmem:[%s5301_s2 + $0x70] sm:$0xff]   ;;  %v4200_v55 = vld [vmem:[%s5301_s2 + $0x78] sm:$0xff]   ;;  %v832_v58 = vld [vmem:[%s4647_s23 + $0x8] sm:$0xf] }
 0x146   : > { %3726 = vmatprep.subr.bf16.mxu1 %v4182_v37  ;;  %v4197_v52 = vld [vmem:[%s5301_s2 + $0x30] sm:$0xff]   ;;  %v4201_v56 = vld [vmem:[%s5301_s2 + $0x38] sm:$0xff]   ;;  %v992_v59 = vld [vmem:[%s4647_s23] sm:$0xf0]  ;;  %v1018_v61 = vrot.slane %v832_v58, 4  ;;  %v857_v63 = vshrl.u32 %v832_v58, 16 }
 0x147   : > { %3663 = vmatpush3.bf16.msra.mxu0 %v4181_v36  ;;  %v4198_v53 = vld [vmem:[%s5301_s2 + $0xf0] sm:$0xff]   ;;  %v4202_v57 = vld [vmem:[%s5301_s2 + $0xf8] sm:$0xff]   ;;  %v1017_v60 = vrot.slane %v992_v59, 4  ;;  %v831_v0 = vld [vmem:[%s4647_s23] sm:$0xf8]  ;;  %v860_v1 = vshll.u32 %v832_v58, 16 }
 0x148   : > { %3664 = vmatprep.subr.bf16.mxu0 %v4184_v39  ;;  %v4199_v54 = vld [vmem:[%s5301_s2 + $0xb0] sm:$0xff]   ;;  %v4203_v62 = vld [vmem:[%s5301_s2 + $0xb8] sm:$0xff]   ;;  %v4204_v2 = vld [vmem:[%s5301_s2 + $0x140] sm:$0xff]   ;;  %v849_v4 = vshrl.u32 %v831_v0, 16  ;;  %v852_v5 = vshll.u32 %v831_v0, 16  ;;  %v859_v6 = vrot.slane %v857_v63, 3 }
 0x149   : > { %3727 = vmatpush3.bf16.msra.mxu1 %v4183_v38  ;;  %v1019_v3 = vsel %vm1016_vm0, %v1017_v60, %v1018_v61  ;;  %v862_v7 = vrot.slane %v860_v1, 4  ;;  %v3432_v8 = vld [vmem:[%s4647_s23 + $0x10] sm:$0xf8]  ;;  %v1059_v9 = vshrl.u32 %v992_v59, 16  ;;  %v4661_v12 = vld [vmem:[%s4647_s23 + $0x18] sm:$0xf] }
 0x14a   : > { %3728 = vmatprep.subr.bf16.mxu1 %v4186_v41  ;;  %2561 = vmatprep.mubr.bf16.mxu0 %v1019_v3  ;;  %v851_v10 = vrot.slane %v849_v4, 3  ;;  %v854_v11 = vrot.slane %v852_v5, 4  ;;  %v1223_v13 = vshrl.u32 %v3432_v8, 16  ;;  %v1226_v14 = vshll.u32 %v3432_v8, 16  ;;  %v4205_v15 = vld [vmem:[%s5301_s2 + $0x100] sm:$0xff]   ;;  %v4206_v38 = vld [vmem:[%s5301_s2 + $0x148] sm:$0xff]  }
 0x14b   : > { %3665 = vmatpush3.bf16.msra.mxu0 %v4185_v40  ;;  %v863_v16 = vor.u32 %v862_v7, %v859_v6  ;;  %v1231_v17 = vshrl.u32 %v4661_v12, 16  ;;  %v1234_v18 = vshll.u32 %v4661_v12, 16  ;;  %v1049_v22 = vld [vmem:[%s4647_s23 + $0x8] sm:$0x1f]  ;;  %v1061_v26 = vrot.slane %v1059_v9, 4 }
 0x14c   : > { %3666 = vmatprep.subr.bf16.mxu0 %v4188_v43  ;;  %v855_v19 = vor.u32 %v854_v11, %v851_v10  ;;  %v1225_v20 = vrot.slane %v1223_v13, 3  ;;  %v1228_v21 = vrot.slane %v1226_v14, 4  ;;  %v1062_v27 = vshll.u32 %v992_v59, 16  ;;  %v834_v25 = vld [vmem:[%s4647_s23 + $0x18] sm:$0xf]  ;;  %v4209_v11 = vld [vmem:[%s5301_s2 + $0x110] sm:$0xff]  }
 0x14d   : > { %3729 = vmatpush3.bf16.msra.mxu1 %v4187_v42  ;;  %v1233_v23 = vrot.slane %v1231_v17, 3  ;;  %v1236_v24 = vrot.slane %v1234_v18, 4  ;;  %v1067_v30 = vshrl.u32 %v1049_v22, 16  ;;  %v1070_v31 = vshll.u32 %v1049_v22, 16  ;;  %v993_v32 = vld [vmem:[%s4647_s23 + $0x10] sm:$0xf0] }
 0x14e   : > { %3730 = vmatprep.subr.bf16.mxu1 %v4190_v45  ;;  %v864_v28 = vsel %vm847_vm1, %v855_v19, %v863_v16  ;;  %v1229_v29 = vor.u32 %v1228_v21, %v1225_v20  ;;  %v833_v33 = vld [vmem:[%s4647_s23 + $0x10] sm:$0xf8]  ;;  %v1064_v35 = vrot.slane %v1062_v27, 5  ;;  %v1020_v36 = vrot.slane %v993_v32, 4  ;;  %v1050_v63 = vld [vmem:[%s4647_s23 + $0x18] sm:$0x1f] }
 0x14f   : > { %3667 = vmatpush3.bf16.msra.mxu0 %v4189_v44  ;;  %v1237_v34 = vor.u32 %v1236_v24, %v1233_v23  ;;  %v1021_v37 = vrot.slane %v834_v25, 4  ;;  %v1069_v39 = vrot.slane %v1067_v30, 4  ;;  %v1072_v40 = vrot.slane %v1070_v31, 5  ;;  %v836_v4 = vld [vmem:[%s4647_s23 + $0x28] sm:$0xf]  ;;  %v4210_v17 = vld [vmem:[%s5301_s2 + $0x158] sm:$0xff]  }
 0x150   : > { %3668 = vmatprep.subr.bf16.mxu0 %v4192_v47  ;;  %v866_v41 = vshrl.u32 %v833_v33, 16  ;;  %v869_v42 = vshll.u32 %v833_v33, 16  ;;  %v1065_v44 = vor.u32 %v1064_v35, %v1061_v26  ;;  %v3434_v47 = vld [vmem:[%s4647_s23 + $0x20] sm:$0xf8]  ;;  %v1076_v3 = vshrl.u32 %v993_v32, 16 }
 0x151   : > { %3731 = vmatpush3.bf16.msra.mxu1 %v4191_v46  ;;  %v1238_v43 = vsel %vm847_vm1, %v1229_v29, %v1237_v34  ;;  %v1022_v45 = vsel %vm1016_vm0, %v1020_v36, %v1021_v37  ;;  %v874_v46 = vshrl.u32 %v834_v25, 16  ;;  %v4694_v5 = vld [vmem:[%s4647_s23 + $0x20] sm:$0xf0]  ;;  %v1079_v8 = vshll.u32 %v993_v32, 16  ;;  %v3436_v22 = vld [vmem:[%s4647_s23 + $0x30] sm:$0xf8] }
 0x152   : > { %3732 = vmatprep.subr.bf16.mxu1 %v4194_v49  ;;  %v4207_v49 = vld [vmem:[%s5301_s2 + $0x108] sm:$0xff]   ;;  %2658 = vmatprep.mubr.bf16.mxu1 %v1238_v43  ;;  %v1084_v9 = vshrl.u32 %v1050_v63, 16  ;;  %v835_v10 = vld [vmem:[%s4647_s23 + $0x20] sm:$0xf8]  ;;  %v1078_v14 = vrot.slane %v1076_v3, 4  ;;  %v1023_v16 = vrot.slane %v4694_v5, 4 }
 0x153   : > { %3669 = vmatpush3.bf16.msra.mxu0 %v4193_v48  ;;  %v4680_v48 = vld [vmem:[%s4647_s23 + $0x28] sm:$0xf]  ;;  %v1081_v20 = vrot.slane %v1079_v8, 5  ;;  %v1024_v24 = vrot.slane %v836_v4, 4  ;;  %v883_v26 = vshrl.u32 %v835_v10, 16  ;;  %v886_v27 = vshll.u32 %v835_v10, 16 }
 0x154   : > { %3670 = vmatprep.subr.bf16.mxu0 %v4196_v51  ;;  %v868_v51 = vrot.slane %v866_v41, 3  ;;  %v1248_v58 = vshrl.u32 %v4680_v48, 16  ;;  %v1086_v21 = vrot.slane %v1084_v9, 4  ;;  %v891_v30 = vshrl.u32 %v836_v4, 16  ;;  %v4212_v3 = vld [vmem:[%s5301_s2 + $0x1c0] sm:$0xff]  }
 0x155   : > { %3733 = vmatpush3.bf16.msra.mxu1 %v4195_v50  ;;  %v1073_v50 = vor.u32 %v1072_v40, %v1069_v39  ;;  %v1082_v29 = vor.u32 %v1081_v20, %v1078_v14  ;;  %v894_v31 = vshll.u32 %v836_v4, 16  ;;  %v1025_v33 = vsel %vm1016_vm0, %v1023_v16, %v1024_v24  ;;  %v1051_v40 = vld [vmem:[%s4647_s23 + $0x28] sm:$0x1f]  ;;  %v1052_v14 = vld [vmem:[%s4647_s23 + $0x38] sm:$0x1f]  ;;  %v4214_v24 = vld [vmem:[%s5301_s2 + $0x160] sm:$0xff]  }
 0x156   : > { %3734 = vmatprep.subr.bf16.mxu1 %v4198_v53  ;;  %v877_v53 = vshll.u32 %v834_v25, 16  ;;  %v4707_v25 = vld [vmem:[%s4647_s23 + $0x38] sm:$0xf]  ;;  %v885_v34 = vrot.slane %v883_v26, 3  ;;  %v888_v35 = vrot.slane %v886_v27, 4  ;;  %v893_v36 = vrot.slane %v891_v30, 3 }
 0x157   : > { %3671 = vmatpush3.bf16.msra.mxu0 %v4197_v52  ;;  %v871_v52 = vrot.slane %v869_v42, 4  ;;  %v1074_v59 = vsel %vm1057_vm2, %v1065_v44, %v1073_v50  ;;  %v896_v37 = vrot.slane %v894_v31, 4  ;;  %v1260_v39 = vshll.u32 %v3436_v22, 16  ;;  %v4732_v8 = vld [vmem:[%s4647_s23 + $0x48] sm:$0xf] }
 0x158   : > { %3672 = vmatprep.subr.bf16.mxu0 %v4200_v55  ;;  %v876_v55 = vrot.slane %v874_v46, 3  ;;  %v879_v61 = vrot.slane %v877_v53, 4  ;;  %v889_v42 = vor.u32 %v888_v35, %v885_v34  ;;  %v1265_v43 = vshrl.u32 %v4707_v25, 16  ;;  %v4747_v30 = vld [vmem:[%s4647_s23 + $0x40] sm:$0xf0] }
 0x159   : > { %3735 = vmatpush3.bf16.msra.mxu1 %v4199_v54  ;;  %v4208_v54 = vld [vmem:[%s5301_s2 + $0x150] sm:$0xff]   ;;  %v872_v60 = vor.u32 %v871_v52, %v868_v51  ;;  %v1268_v44 = vshll.u32 %v4707_v25, 16  ;;  %v897_v46 = vor.u32 %v896_v37, %v893_v36  ;;  %v1093_v50 = vshrl.u32 %v4694_v5, 16  ;;  %v838_v51 = vld [vmem:[%s4647_s23 + $0x38] sm:$0xf]  ;;  %v4215_v37 = vld [vmem:[%s5301_s2 + $0x120] sm:$0xff]  }
 0x15a   : > { %3736 = vmatprep.subr.bf16.mxu1 %v4202_v57  ;;  %v1243_v57 = vshll.u32 %v3434_v47, 16  ;;  %v880_v6 = vor.u32 %v879_v61, %v876_v55  ;;  %v4211_v52 = vld [vmem:[%s5301_s2 + $0x118] sm:$0xff]   ;;  %v1267_v53 = vrot.slane %v1265_v43, 3  ;;  %v1096_v55 = vshll.u32 %v4694_v5, 16  ;;  %v840_v35 = vld [vmem:[%s4647_s23 + $0x48] sm:$0xf] }
 0x15b   : > { %3673 = vmatpush3.bf16.msra.mxu0 %v4201_v56  ;;  %v1240_v56 = vshrl.u32 %v3434_v47, 16  ;;  %v1104_v61 = vshll.u32 %v1051_v40, 16  ;;  %v1027_v5 = vrot.slane %v838_v51, 4  ;;  %v839_v36 = vld [vmem:[%s4647_s23 + $0x40] sm:$0xf8] }
 0x15c   : > { %3786 = vmatprep.subr.bf16.mxu0 %v4204_v2  ;;  %v1245_v1 = vrot.slane %v1243_v57, 4  ;;  %v1250_v2 = vrot.slane %v1248_v58, 3  ;;  %v881_v18 = vsel %vm847_vm1, %v872_v60, %v880_v6  ;;  %v837_v57 = vld [vmem:[%s4647_s23 + $0x30] sm:$0xf8]  ;;  %v898_v58 = vsel %vm847_vm1, %v889_v42, %v897_v46 }
 0x15d   : > { %3737 = vmatpush3.bf16.msra.mxu1 %v4203_v62  ;;  %v1251_v62 = vshll.u32 %v4680_v48, 16  ;;  %v1242_v0 = vrot.slane %v1240_v56, 3  ;;  %v1101_v56 = vshrl.u32 %v1051_v40, 16  ;;  %v1095_v60 = vrot.slane %v1093_v50, 4 }
 0x15e   : > { %2562 = vmatmul.mubr.bf16.vlgmr.msra.gmra.mrb[0].mxu0 %v864_v28  ;;  %v1106_v4 = vrot.slane %v1104_v61, 5  ;;  %v900_v6 = vshrl.u32 %v837_v57, 16  ;;  %3850 = vmatprep.subr.bf16.mxu1 %v4212_v3  ;;  %v1121_v46 = vshll.u32 %v1052_v14, 16  ;;  %v928_v61 = vshll.u32 %v840_v35, 16 }
 0x15f   : > { %3787 = vmatpush3.bf16.msra.mxu0 %v4205_v15  ;;  %2569 = vmatprep.mubr.bf16.mxu0 %v1022_v45  ;;  %v1253_v7 = vrot.slane %v1251_v62, 4  ;;  %v1246_v13 = vor.u32 %v1245_v1, %v1242_v0  ;;  %v1087_v15 = vshll.u32 %v1050_v63, 16  ;;  %v4716_v45 = vld [vmem:[%s4647_s23 + $0x30] sm:$0xf0]  ;;  %v3438_v62 = vld [vmem:[%s4647_s23 + $0x40] sm:$0xf8] }
 0x160   : > { %3788 = vmatprep.subr.bf16.mxu0 %v4206_v38  ;;  %2659 = vmatmul.mubr.bf16.vlgmr.msra.gmra.mrb[0].mxu1 %v1074_v59  ;;  %v1257_v38 = vshrl.u32 %v3436_v22, 16  ;;  %v1098_v0 = vrot.slane %v1096_v55, 5  ;;  %v1103_v1 = vrot.slane %v1101_v56, 4  ;;  %v1277_v22 = vshll.u32 %v3438_v62, 16 }
 0x161   : > { %v1254_v19 = vor.u32 %v1253_v7, %v1250_v2  ;;  %v1089_v23 = vrot.slane %v1087_v15, 5  ;;  %v1026_v2 = vrot.slane %v4716_v45, 4  ;;  %v903_v7 = vshll.u32 %v837_v57, 16 }
 0x162   : > { %v1259_v47 = vrot.slane %v1257_v38, 3  ;;  %v1099_v10 = vor.u32 %v1098_v0, %v1095_v60  ;;  %v1107_v15 = vor.u32 %v1106_v4, %v1103_v1  ;;  %v1110_v34 = vshrl.u32 %v4716_v45, 16 }
 0x163   : > { %3789 = vmatpush3.bf16.msra.mxu0 %v4207_v49  ;;  %v1255_v28 = vsel %vm847_vm1, %v1246_v13, %v1254_v19  ;;  %v1090_v32 = vor.u32 %v1089_v23, %v1086_v21  ;;  %v1262_v49 = vrot.slane %v1260_v39, 4  ;;  %v911_v13 = vshll.u32 %v838_v51, 16  ;;  %v4213_v23 = vld [vmem:[%s5301_s2 + $0x180] sm:$0xff]  }
 0x164   : > { %3790 = vmatprep.subr.bf16.mxu0 %v4208_v54  ;;  %2666 = vmatprep.mubr.bf16.mxu1 %v1255_v28  ;;  %v1270_v54 = vrot.slane %v1268_v44, 4  ;;  %v1028_v16 = vsel %vm1016_vm0, %v1026_v2, %v1027_v5  ;;  %v1274_v21 = vshrl.u32 %v3438_v62, 16  ;;  %v1108_v26 = vsel %vm1057_vm2, %v1099_v10, %v1107_v15  ;;  %v1053_v62 = vld [vmem:[%s4647_s23 + $0x48] sm:$0x1f] }
 0x165   : > { %v1091_v41 = vsel %vm1057_vm2, %v1082_v29, %v1090_v32  ;;  %v1263_v59 = vor.u32 %v1262_v49, %v1259_v47  ;;  %v913_v20 = vrot.slane %v911_v13, 4  ;;  %v1282_v28 = vshrl.u32 %v4732_v8, 16  ;;  %3851 = vmatpush3.bf16.msra.mxu1 %v4213_v23  ;;  %v3440_v47 = vld [vmem:[%s4647_s23 + $0x50] sm:$0xf8]  ;;  %v4217_v13 = vld [vmem:[%s5301_s2 + $0x188] sm:$0xff]  }
 0x166   : > { %2570 = vmatmul.mubr.bf16.gmra.mrb[4].mxu0 %v881_v18  ;;  %v1271_v63 = vor.u32 %v1270_v54, %v1267_v53  ;;  %v905_v18 = vrot.slane %v903_v7, 4  ;;  %v1285_v29 = vshll.u32 %v4732_v8, 16  ;;  %v1276_v32 = vrot.slane %v1274_v21, 3  ;;  %v4760_v53 = vld [vmem:[%s4647_s23 + $0x58] sm:$0xf] }
 0x167   : > { %3791 = vmatpush3.bf16.msra.mxu0 %v4209_v11  ;;  %2577 = vmatprep.mubr.bf16.mxu0 %v1025_v33  ;;  %v908_v11 = vshrl.u32 %v838_v51, 16  ;;  %v1279_v33 = vrot.slane %v1277_v22, 4  ;;  %v1284_v38 = vrot.slane %v1282_v28, 3  ;;  %v1113_v40 = vshll.u32 %v4716_v45, 16  ;;  %v4216_v45 = vld [vmem:[%s5301_s2 + $0x1c8] sm:$0xff]  }
 0x168   : > { %3792 = vmatprep.subr.bf16.mxu0 %v4210_v17  ;;  %2667 = vmatmul.mubr.bf16.gmra.mrb[4].mxu1 %v1091_v41  ;;  %v1272_v9 = vsel %vm847_vm1, %v1263_v59, %v1271_v63  ;;  %v902_v17 = vrot.slane %v900_v6, 3  ;;  %v1287_v39 = vrot.slane %v1285_v29, 4  ;;  %v1118_v41 = vshrl.u32 %v1052_v14, 16  ;;  %v4218_v14 = vld [vmem:[%s5301_s2 + $0x168] sm:$0xff]  }
 0x169   : > { %2674 = vmatprep.mubr.bf16.mxu1 %v1272_v9  ;;  %v910_v19 = vrot.slane %v908_v11, 3  ;;  %v1280_v43 = vor.u32 %v1279_v33, %v1276_v32  ;;  %v1112_v44 = vrot.slane %v1110_v34, 4  ;;  %v1115_v50 = vrot.slane %v1113_v40, 5  ;;  %3852 = vmatprep.subr.bf16.mxu1 %v4216_v45  ;;  %v841_v32 = vld [vmem:[%s4647_s23 + $0x50] sm:$0xf8] }
 0x16a   : > { %v906_v27 = vor.u32 %v905_v18, %v902_v17  ;;  %v1288_v49 = vor.u32 %v1287_v39, %v1284_v38  ;;  %v1120_v51 = vrot.slane %v1118_v41, 4  ;;  %v1123_v54 = vrot.slane %v1121_v46, 5  ;;  %3853 = vmatpush3.bf16.msra.mxu1 %v4217_v13  ;;  %v3442_v41 = vld [vmem:[%s4647_s23 + $0x60] sm:$0xf8]  ;;  %v1054_v45 = vld [vmem:[%s4647_s23 + $0x58] sm:$0x1f] }
 0x16b   : > { %3793 = vmatpush3.bf16.msra.mxu0 %v4211_v52  ;;  %v914_v31 = vor.u32 %v913_v20, %v910_v19  ;;  %v1029_v52 = vrot.slane %v4747_v30, 4  ;;  %v1030_v55 = vrot.slane %v840_v35, 4  ;;  %v917_v56 = vshrl.u32 %v839_v36, 16  ;;  %v842_v19 = vld [vmem:[%s4647_s23 + $0x58] sm:$0xf]  ;;  %v4219_v20 = vld [vmem:[%s5301_s2 + $0x128] sm:$0xff]  }
 0x16c   : > { %3794 = vmatprep.subr.bf16.mxu0 %v4214_v24  ;;  %v920_v57 = vshll.u32 %v839_v36, 16  ;;  %v1116_v59 = vor.u32 %v1115_v50, %v1112_v44  ;;  %v925_v60 = vshrl.u32 %v840_v35, 16  ;;  %v1124_v63 = vor.u32 %v1123_v54, %v1120_v51  ;;  %v4222_v13 = vld [vmem:[%s5301_s2 + $0x1d8] sm:$0xff]  }
 0x16d   : > { %v915_v42 = vsel %vm847_vm1, %v906_v27, %v914_v31  ;;  %v1031_v0 = vsel %vm1016_vm0, %v1029_v52, %v1030_v55  ;;  %v919_v1 = vrot.slane %v917_v56, 3  ;;  %v930_v4 = vrot.slane %v928_v61, 4 }
 0x16e   : > { %2578 = vmatmul.mubr.bf16.gmra.mrb[8].mxu0 %v898_v58  ;;  %v1289_v58 = vsel %vm847_vm1, %v1280_v43, %v1288_v49  ;;  %v922_v2 = vrot.slane %v920_v57, 4  ;;  %v927_v3 = vrot.slane %v925_v60, 3  ;;  %v1291_v5 = vshrl.u32 %v3440_v47, 16 }
 0x16f   : > { %2585 = vmatprep.mubr.bf16.mxu0 %v1028_v16  ;;  %3795 = vmatpush3.bf16.msra.mxu0 %v4215_v37  ;;  %v1294_v6 = vshll.u32 %v3440_v47, 16  ;;  %v1125_v7 = vsel %vm1057_vm2, %v1116_v59, %v1124_v63  ;;  %v1299_v10 = vshrl.u32 %v4760_v53, 16  ;;  %v1302_v11 = vshll.u32 %v4760_v53, 16  ;;  %v4792_v47 = vld [vmem:[%s4647_s23 + $0x68] sm:$0xf] }
 0x170   : > { %2675 = vmatmul.mubr.bf16.gmra.mrb[8].mxu1 %v1108_v26  ;;  %v923_v9 = vor.u32 %v922_v2, %v919_v1  ;;  %v931_v15 = vor.u32 %v930_v4, %v927_v3  ;;  %v1293_v16 = vrot.slane %v1291_v5, 3  ;;  %v1127_v18 = vshrl.u32 %v4747_v30, 16  ;;  %v997_v26 = vld [vmem:[%s4647_s23 + $0x50] sm:$0xf0]  ;;  %3796 = vmatprep.subr.bf16.mxu0 %v4218_v14  ;;  %v4223_v14 = vld [vmem:[%s5301_s2 + $0x198] sm:$0xff]  }
 0x171   : > { %2682 = vmatprep.mubr.bf16.mxu1 %v1289_v58  ;;  %v1296_v17 = vrot.slane %v1294_v6, 4  ;;  %v1301_v21 = vrot.slane %v1299_v10, 3  ;;  %v1304_v22 = vrot.slane %v1302_v11, 4  ;;  %v1130_v23 = vshll.u32 %v4747_v30, 16  ;;  %v4220_v30 = vld [vmem:[%s5301_s2 + $0x1d0] sm:$0xff]  }
 0x172   : > { %v1135_v24 = vshrl.u32 %v1053_v62, 16  ;;  %v932_v27 = vsel %vm847_vm1, %v923_v9, %v931_v15  ;;  %v1129_v29 = vrot.slane %v1127_v18, 4  ;;  %v1138_v31 = vshll.u32 %v1053_v62, 16  ;;  %3854 = vmatprep.subr.bf16.mxu1 %v4220_v30  ;;  %v4221_v2 = vld [vmem:[%s5301_s2 + $0x190] sm:$0xff]   ;;  %v844_v18 = vld [vmem:[%s4647_s23 + $0x68] sm:$0xf] }
 0x173   : > { %v1297_v28 = vor.u32 %v1296_v17, %v1293_v16  ;;  %3797 = vmatpush3.bf16.msra.mxu0 %v4219_v20  ;;  %v1305_v33 = vor.u32 %v1304_v22, %v1301_v21  ;;  %v1132_v34 = vrot.slane %v1130_v23, 5  ;;  %v1032_v36 = vrot.slane %v997_v26, 4  ;;  %3855 = vmatpush3.bf16.msra.mxu1 %v4221_v2  ;;  %v3444_v30 = vld [vmem:[%s4647_s23 + $0x70] sm:$0xf8] }
 0x174   : > { %v1137_v35 = vrot.slane %v1135_v24, 4  ;;  %v1140_v37 = vrot.slane %v1138_v31, 5  ;;  %v1033_v38 = vrot.slane %v842_v19, 4  ;;  %v934_v39 = vshrl.u32 %v841_v32, 16  ;;  %3856 = vmatprep.subr.bf16.mxu1 %v4222_v13  ;;  %v999_v13 = vld [vmem:[%s4647_s23 + $0x70] sm:$0xf0] }
 0x175   : > { %v937_v40 = vshll.u32 %v841_v32, 16  ;;  %v1133_v43 = vor.u32 %v1132_v34, %v1129_v29  ;;  %v942_v44 = vshrl.u32 %v842_v19, 16  ;;  %v945_v46 = vshll.u32 %v842_v19, 16  ;;  %v998_v19 = vld [vmem:[%s4647_s23 + $0x60] sm:$0xf0]  ;;  %v4224_v29 = vld [vmem:[%s5301_s2 + $0x170] sm:$0xff]  }
 0x176   : > { %2586 = vmatmul.mubr.bf16.gmra.mrb[12].mxu0 %v915_v42  ;;  %v1306_v42 = vsel %vm847_vm1, %v1297_v28, %v1305_v33  ;;  %v1141_v49 = vor.u32 %v1140_v37, %v1137_v35  ;;  %v1034_v50 = vsel %vm1016_vm0, %v1032_v36, %v1033_v38  ;;  %v936_v51 = vrot.slane %v934_v39, 3  ;;  %3798 = vmatprep.subr.bf16.mxu0 %v4224_v29  ;;  %v4819_v37 = vld [vmem:[%s4647_s23 + $0x78] sm:$0xf] }
 0x177   : > { %2593 = vmatprep.mubr.bf16.mxu0 %v1031_v0  ;;  %v939_v52 = vrot.slane %v937_v40, 4  ;;  %v944_v54 = vrot.slane %v942_v44, 3  ;;  %v947_v55 = vrot.slane %v945_v46, 4  ;;  %v1308_v56 = vshrl.u32 %v3442_v41, 16  ;;  %3857 = vmatpush3.bf16.msra.mxu1 %v4223_v14 }
 0x178   : > { %2683 = vmatmul.mubr.bf16.gmra.mrb[12].mxu1 %v1125_v7  ;;  %v1311_v57 = vshll.u32 %v3442_v41, 16  ;;  %v1142_v58 = vsel %vm1057_vm2, %v1133_v43, %v1141_v49  ;;  %v1316_v60 = vshrl.u32 %v4792_v47, 16  ;;  %v1319_v61 = vshll.u32 %v4792_v47, 16 }
 0x179   : > { %2690 = vmatprep.mubr.bf16.mxu1 %v1306_v42  ;;  %v940_v59 = vor.u32 %v939_v52, %v936_v51  ;;  %v948_v62 = vor.u32 %v947_v55, %v944_v54  ;;  %v1310_v63 = vrot.slane %v1308_v56, 3  ;;  %v1144_v1 = vshrl.u32 %v997_v26, 16  ;;  %v4225_v42 = vld [vmem:[%s5301_s2 + $0x130] sm:$0xff]   ;;  %v4227_v56 = vld [vmem:[%s5301_s2 + $0x1a0] sm:$0xff]  }
 0x17a   : > { %v1313_v0 = vrot.slane %v1311_v57, 4  ;;  %v1318_v3 = vrot.slane %v1316_v60, 3  ;;  %v1321_v4 = vrot.slane %v1319_v61, 4  ;;  %v1147_v5 = vshll.u32 %v997_v26, 16  ;;  %3799 = vmatpush3.bf16.msra.mxu0 %v4225_v42  ;;  %v4232_v42 = vld [vmem:[%s5301_s2 + $0x1f0] sm:$0xff]  }
 0x17b   : > { %v1152_v6 = vshrl.u32 %v1054_v45, 16  ;;  %v949_v7 = vsel %vm847_vm1, %v940_v59, %v948_v62  ;;  %v1146_v10 = vrot.slane %v1144_v1, 4  ;;  %v1155_v11 = vshll.u32 %v1054_v45, 16  ;;  %v1055_v45 = vld [vmem:[%s4647_s23 + $0x68] sm:$0x1f] }
 0x17c   : > { %v1314_v9 = vor.u32 %v1313_v0, %v1310_v63  ;;  %v1322_v15 = vor.u32 %v1321_v4, %v1318_v3  ;;  %v1149_v16 = vrot.slane %v1147_v5, 5  ;;  %v1035_v21 = vrot.slane %v998_v19, 4  ;;  %v4228_v1 = vld [vmem:[%s5301_s2 + $0x1e8] sm:$0xff]  }
 0x17d   : > { %v1154_v17 = vrot.slane %v1152_v6, 4  ;;  %v1157_v20 = vrot.slane %v1155_v11, 5  ;;  %v1036_v22 = vrot.slane %v844_v18, 4  ;;  %v959_v23 = vshrl.u32 %v844_v18, 16  ;;  %v4229_v5 = vld [vmem:[%s5301_s2 + $0x1a8] sm:$0xff]  }
 0x17e   : > { %2594 = vmatmul.mubr.bf16.gmra.mrb[16].mxu0 %v932_v27  ;;  %v1323_v24 = vsel %vm847_vm1, %v1314_v9, %v1322_v15  ;;  %v1150_v26 = vor.u32 %v1149_v16, %v1146_v10  ;;  %v843_v27 = vld [vmem:[%s4647_s23 + $0x60] sm:$0xf8]  ;;  %v962_v28 = vshll.u32 %v844_v18, 16  ;;  %v1325_v41 = vshrl.u32 %v3444_v30, 16  ;;  %v4230_v9 = vld [vmem:[%s5301_s2 + $0x178] sm:$0xff]  }
 0x17f   : > { %2601 = vmatprep.mubr.bf16.mxu0 %v1034_v50  ;;  %v1158_v31 = vor.u32 %v1157_v20, %v1154_v17  ;;  %v1037_v32 = vsel %vm1016_vm0, %v1035_v21, %v1036_v22  ;;  %v951_v33 = vshrl.u32 %v843_v27, 16  ;;  %v954_v34 = vshll.u32 %v843_v27, 16  ;;  %v4226_v50 = vld [vmem:[%s5301_s2 + $0x1e0] sm:$0xff]   ;;  %v846_v11 = vld [vmem:[%s4647_s23 + $0x78] sm:$0xf]  ;;  %3800 = vmatprep.subr.bf16.mxu0 %v4230_v9 }
 0x180   : > { %2691 = vmatmul.mubr.bf16.gmra.mrb[16].mxu1 %v1142_v58  ;;  %v961_v35 = vrot.slane %v959_v23, 3  ;;  %v964_v36 = vrot.slane %v962_v28, 4  ;;  %v1328_v44 = vshll.u32 %v3444_v30, 16  ;;  %v1333_v46 = vshrl.u32 %v4819_v37, 16  ;;  %3858 = vmatprep.subr.bf16.mxu1 %v4226_v50  ;;  %v845_v17 = vld [vmem:[%s4647_s23 + $0x70] sm:$0xf8] }
 0x181   : > { %2698 = vmatprep.mubr.bf16.mxu1 %v1323_v24  ;;  %v1159_v38 = vsel %vm1057_vm2, %v1150_v26, %v1158_v31  ;;  %v953_v39 = vrot.slane %v951_v33, 3  ;;  %v956_v40 = vrot.slane %v954_v34, 4  ;;  %v1336_v49 = vshll.u32 %v4819_v37, 16  ;;  %3859 = vmatpush3.bf16.msra.mxu1 %v4227_v56  ;;  %v3446_v24 = vld [vmem:[%s4647_s23 + $0x80] sm:$0xf8] }
 0x182   : > { %v965_v43 = vor.u32 %v964_v36, %v961_v35  ;;  %v1327_v52 = vrot.slane %v1325_v41, 3  ;;  %v1161_v54 = vshrl.u32 %v998_v19, 16  ;;  %v1164_v55 = vshll.u32 %v998_v19, 16  ;;  %3860 = vmatprep.subr.bf16.mxu1 %v4228_v1  ;;  %v4852_v26 = vld [vmem:[%s4647_s23 + $0x88] sm:$0xf] }
 0x183   : > { %v957_v51 = vor.u32 %v956_v40, %v953_v39  ;;  %v1330_v57 = vrot.slane %v1328_v44, 4  ;;  %v1335_v58 = vrot.slane %v1333_v46, 3  ;;  %v1338_v59 = vrot.slane %v1336_v49, 4  ;;  %v1056_v39 = vld [vmem:[%s4647_s23 + $0x78] sm:$0x1f] }
 0x184   : > { %v1169_v60 = vshrl.u32 %v1055_v45, 16  ;;  %v1163_v62 = vrot.slane %v1161_v54, 4  ;;  %v1166_v63 = vrot.slane %v1164_v55, 5  ;;  %v1172_v0 = vshll.u32 %v1055_v45, 16  ;;  %v4233_v54 = vld [vmem:[%s5301_s2 + $0x1b0] sm:$0xff]  }
 0x185   : > { %v966_v61 = vsel %vm847_vm1, %v957_v51, %v965_v43  ;;  %v1331_v2 = vor.u32 %v1330_v57, %v1327_v52  ;;  %v1339_v3 = vor.u32 %v1338_v59, %v1335_v58  ;;  %v1038_v15 = vrot.slane %v999_v13, 4  ;;  %3861 = vmatpush3.bf16.msra.mxu1 %v4229_v5  ;;  %v4234_v58 = vld [vmem:[%s5301_s2 + $0x1f8] sm:$0xff]  }
 0x186   : > { %2602 = vmatmul.mubr.bf16.gmra.mrb[20].mxu0 %v949_v7  ;;  %v1171_v4 = vrot.slane %v1169_v60, 4  ;;  %v1167_v6 = vor.u32 %v1166_v63, %v1163_v62  ;;  %v1174_v7 = vrot.slane %v1172_v0, 5  ;;  %v1039_v16 = vrot.slane %v846_v11, 4  ;;  %3862 = vmatprep.subr.bf16.mxu1 %v4232_v42  ;;  %v4235_v60 = vld [vmem:[%s5301_s2 + $0x1b8] sm:$0xff]   ;;  %v3448_v0 = vld [vmem:[%s4647_s23 + $0x10] sm:$0xf0] }
 0x187   : > { %2609 = vmatprep.mubr.bf16.mxu0 %v1037_v32  ;;  %v1340_v10 = vsel %vm847_vm1, %v1331_v2, %v1339_v3  ;;  %v968_v18 = vshrl.u32 %v845_v17, 16  ;;  %v971_v19 = vshll.u32 %v845_v17, 16  ;;  %v976_v20 = vshrl.u32 %v846_v11, 16  ;;  %v3456_v1 = vld [vmem:[%s4647_s23 + $0x18] sm:$0x1f] }
 0x188   : > { %2699 = vmatmul.mubr.bf16.gmra.mrb[20].mxu1 %v1159_v38  ;;  %v1175_v14 = vor.u32 %v1174_v7, %v1171_v4  ;;  %v979_v21 = vshll.u32 %v846_v11, 16  ;;  %v1040_v23 = vsel %vm1016_vm0, %v1038_v15, %v1039_v16  ;;  %v1342_v32 = vshrl.u32 %v3446_v24, 16  ;;  %v4231_v38 = vld [vmem:[%s5301_s2 + $0x138] sm:$0xff]   ;;  %v3467_v17 = vld [vmem:[%s4647_s23 + $0x28] sm:$0xf] }
 0x189   : > { %2706 = vmatprep.mubr.bf16.mxu1 %v1340_v10  ;;  %v970_v27 = vrot.slane %v968_v18, 3  ;;  %v973_v28 = vrot.slane %v971_v19, 4  ;;  %v978_v29 = vrot.slane %v976_v20, 3  ;;  %v1345_v33 = vshll.u32 %v3446_v24, 16  ;;  %3801 = vmatpush3.bf16.msra.mxu0 %v4231_v38  ;;  %v4236_v10 = vld [vmem:[%s5301_s2 + $0x200] sm:$0xff]  }
 0x18a   : > { %v1176_v22 = vsel %vm1057_vm2, %v1167_v6, %v1175_v14  ;;  %v981_v31 = vrot.slane %v979_v21, 4  ;;  %v1350_v34 = vshrl.u32 %v4852_v26, 16  ;;  %v1353_v35 = vshll.u32 %v4852_v26, 16  ;;  %3863 = vmatpush3.bf16.msra.mxu1 %v4233_v54  ;;  %3994 = vmatprep.subr.bf16.mxu0 %v4236_v10  ;;  %v4884_v18 = vld [vmem:[%s4647_s23 + $0x20] sm:$0xf0] }
 0x18b   : > { %v974_v36 = vor.u32 %v973_v28, %v970_v27  ;;  %v1178_v40 = vshrl.u32 %v999_v13, 16  ;;  %v1181_v41 = vshll.u32 %v999_v13, 16  ;;  %v1344_v43 = vrot.slane %v1342_v32, 3  ;;  %3864 = vmatprep.subr.bf16.mxu1 %v4234_v58  ;;  %v3466_v19 = vld [vmem:[%s4647_s23 + $0x20] sm:$0xf8] }
 0x18c   : > { %v982_v30 = vor.u32 %v981_v31, %v978_v29  ;;  %v1347_v44 = vrot.slane %v1345_v33, 4  ;;  %v1352_v46 = vrot.slane %v1350_v34, 3  ;;  %v1355_v49 = vrot.slane %v1353_v35, 4  ;;  %v3449_v24 = vld [vmem:[%s4647_s23 + $0x20] sm:$0xf0] }
 0x18d   : > { %v1180_v51 = vrot.slane %v1178_v40, 4  ;;  %v1183_v52 = vrot.slane %v1181_v41, 5  ;;  %v1186_v45 = vshrl.u32 %v1056_v39, 16  ;;  %v1189_v57 = vshll.u32 %v1056_v39, 16  ;;  %v3457_v27 = vld [vmem:[%s4647_s23 + $0x28] sm:$0x1f] }
 0x18e   : > { %2610 = vmatmul.mubr.bf16.gmra.mrb[24].mxu0 %v966_v61  ;;  %v983_v50 = vsel %vm847_vm1, %v974_v36, %v982_v30  ;;  %v1348_v55 = vor.u32 %v1347_v44, %v1344_v43  ;;  %v1356_v56 = vor.u32 %v1355_v49, %v1352_v46  ;;  %v1391_v2 = vrot.slane %v4661_v12, 4  ;;  %3865 = vmatpush3.bf16.msra.mxu1 %v4235_v60  ;;  %v4237_v30 = vld [vmem:[%s5301_s2 + $0x208] sm:$0xff]   ;;  %v3469_v42 = vld [vmem:[%s4647_s23 + $0x38] sm:$0xf]  ;;  %v4238_v60 = vld [vmem:[%s5301_s2 + $0x210] sm:$0xff]  }
 0x18f   : > { %2617 = vmatprep.mubr.bf16.mxu0 %v1040_v23  ;;  %v1188_v59 = vrot.slane %v1186_v45, 4  ;;  %v1184_v62 = vor.u32 %v1183_v52, %v1180_v51  ;;  %v1191_v63 = vrot.slane %v1189_v57, 5  ;;  %v1431_v3 = vshrl.u32 %v3448_v0, 16 }
 0x190   : > { %2707 = vmatmul.mubr.bf16.gmra.mrb[24].mxu1 %v1176_v22  ;;  %v1357_v61 = vsel %vm847_vm1, %v1348_v55, %v1356_v56  ;;  %v1434_v4 = vshll.u32 %v3448_v0, 16  ;;  %v1439_v5 = vshrl.u32 %v3456_v1, 16  ;;  %v1442_v6 = vshll.u32 %v3456_v1, 16  ;;  %v3468_v55 = vld [vmem:[%s4647_s23 + $0x30] sm:$0xf8] }
 0x191   : > { %2714 = vmatprep.mubr.bf16.mxu1 %v1357_v61  ;;  %v1192_v7 = vor.u32 %v1191_v63, %v1188_v59  ;;  %v1390_v9 = vrot.slane %v3448_v0, 4  ;;  %v1433_v11 = vrot.slane %v1431_v3, 4  ;;  %v1603_v22 = vshrl.u32 %v3467_v17, 16  ;;  %v3450_v1 = vld [vmem:[%s4647_s23 + $0x30] sm:$0xf0] }
 0x192   : > { %v1436_v13 = vrot.slane %v1434_v4, 5  ;;  %v1441_v14 = vrot.slane %v1439_v5, 4  ;;  %v1444_v12 = vrot.slane %v1442_v6, 5  ;;  %v1606_v23 = vshll.u32 %v3467_v17, 16 }
 0x193   : > { %v1193_v15 = vsel %vm1057_vm2, %v1184_v62, %v1192_v7  ;;  %v1392_v16 = vsel %vm1016_vm0, %v1390_v9, %v1391_v2  ;;  %v1762_v28 = vrot.slane %v4884_v18, 4  ;;  %v1763_v29 = vrot.slane %v3467_v17, 4 }
 0x194   : > { %v1437_v20 = vor.u32 %v1436_v13, %v1433_v11  ;;  %v1445_v21 = vor.u32 %v1444_v12, %v1441_v14  ;;  %v1595_v31 = vshrl.u32 %v3466_v19, 16  ;;  %v1598_v32 = vshll.u32 %v3466_v19, 16 }
 0x195   : > { %v1605_v34 = vrot.slane %v1603_v22, 3  ;;  %v1608_v35 = vrot.slane %v1606_v23, 4  ;;  %v1448_v36 = vshrl.u32 %v3449_v24, 16  ;;  %v1764_v38 = vsel %vm1016_vm0, %v1762_v28, %v1763_v29  ;;  %v4917_v22 = vld [vmem:[%s4647_s23 + $0x40] sm:$0xf0] }
 0x196   : > { %2618 = vmatmul.mubr.bf16.gmra.mrb[28].mxu0 %v983_v50  ;;  %v1446_v33 = vsel %vm1057_vm2, %v1437_v20, %v1445_v21  ;;  %v1597_v39 = vrot.slane %v1595_v31, 3  ;;  %v1600_v40 = vrot.slane %v1598_v32, 4  ;;  %v1451_v41 = vshll.u32 %v3449_v24, 16  ;;  %v3483_v50 = vld [vmem:[%s4647_s23 + $0x30] sm:$0xf0]  ;;  %v4240_v31 = vld [vmem:[%s5301_s2 + $0x220] sm:$0xff]  }
 0x197   : > { %2755 = vmatprep.mubr.bf16.mxu0 %v1446_v33  ;;  %v1609_v43 = vor.u32 %v1608_v35, %v1605_v34  ;;  %v1450_v44 = vrot.slane %v1448_v36, 4  ;;  %v1456_v46 = vshrl.u32 %v3457_v27, 16  ;;  %v1459_v49 = vshll.u32 %v3457_v27, 16  ;;  %v3471_v21 = vld [vmem:[%s4647_s23 + $0x48] sm:$0xf] }
 0x198   : > { %2715 = vmatmul.mubr.bf16.gmra.mrb[28].mxu1 %v1193_v15  ;;  %v1601_v51 = vor.u32 %v1600_v40, %v1597_v39  ;;  %v1453_v52 = vrot.slane %v1451_v41, 5  ;;  %v1393_v45 = vrot.slane %v3449_v24, 4  ;;  %v1394_v54 = vrot.slane %v4680_v48, 4  ;;  %v4239_v15 = vld [vmem:[%s5301_s2 + $0x218] sm:$0xff]   ;;  %v3470_v29 = vld [vmem:[%s4647_s23 + $0x40] sm:$0xf8] }
 0x199   : > { %2852 = vmatprep.mubr.bf16.mxu1 %v1764_v38  ;;  %v1458_v56 = vrot.slane %v1456_v46, 4  ;;  %v1461_v57 = vrot.slane %v1459_v49, 5  ;;  %v1765_v58 = vrot.slane %v3483_v50, 4  ;;  %v1766_v59 = vrot.slane %v3469_v42, 4  ;;  %v3451_v40 = vld [vmem:[%s4647_s23 + $0x40] sm:$0xf0] }
 0x19a   : > { %v1610_v61 = vsel %vm847_vm1, %v1601_v51, %v1609_v43  ;;  %v1454_v62 = vor.u32 %v1453_v52, %v1450_v44  ;;  %v1395_v63 = vsel %vm1016_vm0, %v1393_v45, %v1394_v54  ;;  %v1820_v0 = vshrl.u32 %v3483_v50, 16  ;;  %v3459_v46 = vld [vmem:[%s4647_s23 + $0x48] sm:$0x1f]  ;;  %v4931_v52 = vld [vmem:[%s4647_s23 + $0x50] sm:$0xf0] }
 0x19b   : > { %v1462_v48 = vor.u32 %v1461_v57, %v1458_v56  ;;  %v1767_v2 = vsel %vm1016_vm0, %v1765_v58, %v1766_v59  ;;  %v1823_v3 = vshll.u32 %v3483_v50, 16  ;;  %v1612_v4 = vshrl.u32 %v3468_v55, 16 }
 0x19c   : > { %v4906_v5 = vrot.slane %v1820_v0, 4  ;;  %v1615_v6 = vshll.u32 %v3468_v55, 16  ;;  %v1620_v7 = vshrl.u32 %v3469_v42, 16  ;;  %v1623_v9 = vshll.u32 %v3469_v42, 16 }
 0x19d   : > { %v1463_v11 = vsel %vm1057_vm2, %v1454_v62, %v1462_v48  ;;  %v4910_v13 = vrot.slane %v1823_v3, 5  ;;  %v1614_v14 = vrot.slane %v1612_v4, 3  ;;  %v1465_v12 = vshrl.u32 %v3450_v1, 16  ;;  %v3472_v48 = vld [vmem:[%s4647_s23 + $0x50] sm:$0xf8] }
 0x19e   : > { %2756 = vmatmul.mubr.bf16.vlgmr.msra.gmra.mrb[32].mxu0 %v1392_v16  ;;  %v1617_v16 = vrot.slane %v1615_v6, 4  ;;  %v1622_v17 = vrot.slane %v1620_v7, 3  ;;  %v1625_v19 = vrot.slane %v1623_v9, 4  ;;  %v1468_v20 = vshll.u32 %v3450_v1, 16  ;;  %v3473_v7 = vld [vmem:[%s4647_s23 + $0x58] sm:$0xf] }
 0x19f   : > { %3995 = vmatpush3.bf16.msra.mxu0 %v4236_v10  ;;  %v3458_v10 = vld [vmem:[%s4647_s23 + $0x38] sm:$0x1f]  ;;  %2763 = vmatprep.mubr.bf16.mxu0 %v1463_v11  ;;  %v1467_v23 = vrot.slane %v1465_v12, 4  ;;  %v1396_v28 = vrot.slane %v3450_v1, 4  ;;  %v1397_v35 = vrot.slane %v4707_v25, 4  ;;  %v1768_v38 = vrot.slane %v4917_v22, 4 }
 0x1a0   : > { %3996 = vmatprep.subr.bf16.mxu0 %v4237_v30  ;;  %2853 = vmatmul.mubr.bf16.vlgmr.msra.gmra.mrb[32].mxu1 %v1610_v61  ;;  %v1473_v24 = vshrl.u32 %v3458_v10, 16  ;;  %v1476_v27 = vshll.u32 %v3458_v10, 16  ;;  %v1618_v32 = vor.u32 %v1617_v16, %v1614_v14  ;;  %v1626_v33 = vor.u32 %v1625_v19, %v1622_v17  ;;  %v4241_v61 = vld [vmem:[%s5301_s2 + $0x228] sm:$0xff]   ;;  %v3452_v12 = vld [vmem:[%s4647_s23 + $0x50] sm:$0xf0] }
 0x1a1   : > { %2860 = vmatprep.mubr.bf16.mxu1 %v1767_v2  ;;  %v1470_v34 = vrot.slane %v1468_v20, 5  ;;  %v1769_v39 = vrot.slane %v3471_v21, 4  ;;  %v1398_v43 = vsel %vm1016_vm0, %v1396_v28, %v1397_v35  ;;  %v1629_v44 = vshrl.u32 %v3470_v29, 16  ;;  %v3460_v20 = vld [vmem:[%s4647_s23 + $0x58] sm:$0x1f] }
 0x1a2   : > { %v1475_v36 = vrot.slane %v1473_v24, 4  ;;  %v1627_v41 = vsel %vm847_vm1, %v1618_v32, %v1626_v33  ;;  %v1632_v50 = vshll.u32 %v3470_v29, 16  ;;  %v1637_v51 = vshrl.u32 %v3471_v21, 16 }
 0x1a3   : > { %3997 = vmatpush3.bf16.msra.mxu0 %v4237_v30  ;;  %v1478_v30 = vrot.slane %v1476_v27, 5  ;;  %v1471_v42 = vor.u32 %v1470_v34, %v1467_v23  ;;  %v1770_v25 = vsel %vm1016_vm0, %v1768_v38, %v1769_v39  ;;  %v1631_v45 = vrot.slane %v1629_v44, 3  ;;  %v4952_v38 = vld [vmem:[%s4647_s23 + $0x60] sm:$0xf0]  ;;  %v4243_v44 = vld [vmem:[%s5301_s2 + $0x238] sm:$0xff]  }
 0x1a4   : > { %3998 = vmatprep.subr.bf16.mxu0 %v4238_v60  ;;  %v1640_v54 = vshll.u32 %v3471_v21, 16  ;;  %v1482_v55 = vshrl.u32 %v3451_v40, 16  ;;  %v1485_v56 = vshll.u32 %v3451_v40, 16  ;;  %v1634_v58 = vrot.slane %v1632_v50, 4 }
 0x1a5   : > { %v1479_v49 = vor.u32 %v1478_v30, %v1475_v36  ;;  %v1639_v59 = vrot.slane %v1637_v51, 3  ;;  %v1493_v1 = vshll.u32 %v3459_v46, 16  ;;  %v1399_v4 = vrot.slane %v3451_v40, 4  ;;  %v3475_v30 = vld [vmem:[%s4647_s23 + $0x68] sm:$0xf] }
 0x1a6   : > { %2764 = vmatmul.mubr.bf16.gmra.mrb[36].mxu0 %v1395_v63  ;;  %v1642_v62 = vrot.slane %v1640_v54, 4  ;;  %v1484_v63 = vrot.slane %v1482_v55, 4  ;;  %v1487_v0 = vrot.slane %v1485_v56, 5  ;;  %v1635_v2 = vor.u32 %v1634_v58, %v1631_v45  ;;  %v4960_v51 = vld [vmem:[%s4647_s23 + $0x60] sm:$0xf0] }
 0x1a7   : > { %3999 = vmatpush3.bf16.msra.mxu0 %v4238_v60  ;;  %v1480_v57 = vsel %vm1057_vm2, %v1471_v42, %v1479_v49  ;;  %v1490_v60 = vshrl.u32 %v3459_v46, 16  ;;  %v1400_v6 = vrot.slane %v4732_v8, 4  ;;  %v1495_v11 = vrot.slane %v1493_v1, 5  ;;  %v4242_v8 = vld [vmem:[%s5301_s2 + $0x230] sm:$0xff]  }
 0x1a8   : > { %4000 = vmatprep.subr.bf16.mxu0 %v4239_v15  ;;  %2861 = vmatmul.mubr.bf16.gmra.mrb[36].mxu1 %v1627_v41  ;;  %v1643_v9 = vor.u32 %v1642_v62, %v1639_v59  ;;  %v1488_v10 = vor.u32 %v1487_v0, %v1484_v63  ;;  %v1771_v14 = vrot.slane %v4931_v52, 4  ;;  %v1772_v16 = vrot.slane %v3473_v7, 4 }
 0x1a9   : > { %2868 = vmatprep.mubr.bf16.mxu1 %v1770_v25  ;;  %2771 = vmatprep.mubr.bf16.mxu0 %v1480_v57  ;;  %v1492_v3 = vrot.slane %v1490_v60, 4  ;;  %v1646_v17 = vshrl.u32 %v3472_v48, 16  ;;  %v1649_v19 = vshll.u32 %v3472_v48, 16  ;;  %v1654_v24 = vshrl.u32 %v3473_v7, 16  ;;  %v3461_v57 = vld [vmem:[%s4647_s23 + $0x68] sm:$0x1f] }
 0x1aa   : > { %v1644_v21 = vsel %vm847_vm1, %v1635_v2, %v1643_v9  ;;  %v1657_v27 = vshll.u32 %v3473_v7, 16  ;;  %v1773_v28 = vsel %vm1016_vm0, %v1771_v14, %v1772_v16  ;;  %v1499_v32 = vshrl.u32 %v3452_v12, 16  ;;  %v3476_v16 = vld [vmem:[%s4647_s23 + $0x70] sm:$0xf8] }
 0x1ab   : > { %4001 = vmatpush3.bf16.msra.mxu0 %v4239_v15  ;;  %v1401_v15 = vsel %vm1016_vm0, %v1399_v4, %v1400_v6  ;;  %v1496_v23 = vor.u32 %v1495_v11, %v1492_v3  ;;  %v1648_v29 = vrot.slane %v1646_v17, 3  ;;  %v1656_v34 = vrot.slane %v1654_v24, 3 }
 0x1ac   : > { %4002 = vmatprep.subr.bf16.mxu0 %v4240_v31  ;;  %v1659_v35 = vrot.slane %v1657_v27, 4  ;;  %v1502_v36 = vshll.u32 %v3452_v12, 16  ;;  %v1501_v40 = vrot.slane %v1499_v32, 4  ;;  %v1507_v41 = vshrl.u32 %v3460_v20, 16 }
 0x1ad   : > { %v1497_v33 = vsel %vm1057_vm2, %v1488_v10, %v1496_v23  ;;  %v1510_v42 = vshll.u32 %v3460_v20, 16  ;;  %v1402_v25 = vrot.slane %v3452_v12, 4  ;;  %v1403_v50 = vrot.slane %v4760_v53, 4  ;;  %v4971_v10 = vld [vmem:[%s4647_s23 + $0x70] sm:$0xf0] }
 0x1ae   : > { %2772 = vmatmul.mubr.bf16.gmra.mrb[40].mxu0 %v1398_v43  ;;  %v3474_v43 = vld [vmem:[%s4647_s23 + $0x60] sm:$0xf8]  ;;  %v1660_v46 = vor.u32 %v1659_v35, %v1656_v34  ;;  %v1504_v49 = vrot.slane %v1502_v36, 5  ;;  %v1509_v45 = vrot.slane %v1507_v41, 4  ;;  %v1774_v55 = vrot.slane %v4952_v38, 4 }
 0x1af   : > { %4003 = vmatpush3.bf16.msra.mxu0 %v4240_v31  ;;  %v1651_v31 = vrot.slane %v1649_v19, 4  ;;  %2779 = vmatprep.mubr.bf16.mxu0 %v1497_v33  ;;  %v1512_v54 = vrot.slane %v1510_v42, 5  ;;  %v1775_v56 = vrot.slane %v3475_v30, 4  ;;  %v1404_v60 = vsel %vm1016_vm0, %v1402_v25, %v1403_v50  ;;  %v4988_v25 = vld [vmem:[%s4647_s23 + $0x80] sm:$0xf0] }
 0x1b0   : > { %4004 = vmatprep.subr.bf16.mxu0 %v4241_v61  ;;  %2869 = vmatmul.mubr.bf16.gmra.mrb[40].mxu1 %v1644_v21  ;;  %v1505_v59 = vor.u32 %v1504_v49, %v1501_v40  ;;  %v1666_v63 = vshll.u32 %v3474_v43, 16  ;;  %v1671_v0 = vshrl.u32 %v3475_v30, 16  ;;  %v1674_v48 = vshll.u32 %v3475_v30, 16 }
 0x1b1   : > { %2876 = vmatprep.mubr.bf16.mxu1 %v1773_v28  ;;  %v1652_v39 = vor.u32 %v1651_v31, %v1648_v29  ;;  %v1513_v62 = vor.u32 %v1512_v54, %v1509_v45  ;;  %v1776_v53 = vsel %vm1016_vm0, %v1774_v55, %v1775_v56  ;;  %v1516_v2 = vshrl.u32 %v4960_v51, 16  ;;  %v4978_v28 = vld [vmem:[%s4647_s23 + $0x70] sm:$0xf0]  ;;  %v3478_v55 = vld [vmem:[%s4647_s23 + $0x80] sm:$0xf8] }
 0x1b2   : > { %v1519_v3 = vshll.u32 %v4960_v51, 16  ;;  %v1668_v6 = vrot.slane %v1666_v63, 4  ;;  %v1673_v7 = vrot.slane %v1671_v0, 3  ;;  %v1524_v9 = vshrl.u32 %v3461_v57, 16  ;;  %v4996_v0 = vld [vmem:[%s4647_s23 + $0x80] sm:$0xf0] }
 0x1b3   : > { %4005 = vmatpush3.bf16.msra.mxu0 %v4241_v61  ;;  %v1661_v58 = vsel %vm847_vm1, %v1652_v39, %v1660_v46  ;;  %v1663_v61 = vshrl.u32 %v3474_v43, 16  ;;  %v1514_v4 = vsel %vm1057_vm2, %v1505_v59, %v1513_v62  ;;  %v1676_v11 = vrot.slane %v1674_v48, 4  ;;  %v3462_v39 = vld [vmem:[%s4647_s23 + $0x78] sm:$0x1f] }
 0x1b4   : > { %4006 = vmatprep.subr.bf16.mxu0 %v4242_v8  ;;  %v1518_v14 = vrot.slane %v1516_v2, 4  ;;  %v1521_v12 = vrot.slane %v1519_v3, 5  ;;  %v1526_v19 = vrot.slane %v1524_v9, 4  ;;  %v1405_v20 = vrot.slane %v4960_v51, 4 }
 0x1b5   : > { %v1665_v1 = vrot.slane %v1663_v61, 3  ;;  %v1677_v21 = vor.u32 %v1676_v11, %v1673_v7  ;;  %v1777_v27 = vrot.slane %v4971_v10, 4  ;;  %v1406_v29 = vrot.slane %v4792_v47, 4 }
 0x1b6   : > { %2780 = vmatmul.mubr.bf16.gmra.mrb[44].mxu0 %v1401_v15  ;;  %v1527_v15 = vshll.u32 %v3461_v57, 16  ;;  %v1522_v23 = vor.u32 %v1521_v12, %v1518_v14  ;;  %v1680_v32 = vshrl.u32 %v3476_v16, 16  ;;  %v1683_v33 = vshll.u32 %v3476_v16, 16 }
 0x1b7   : > { %4007 = vmatpush3.bf16.msra.mxu0 %v4242_v8  ;;  %2787 = vmatprep.mubr.bf16.mxu0 %v1514_v4  ;;  %v1669_v17 = vor.u32 %v1668_v6, %v1665_v1  ;;  %v3477_v8 = vld [vmem:[%s4647_s23 + $0x78] sm:$0xf]  ;;  %v1533_v43 = vshrl.u32 %v4978_v28, 16  ;;  %v1536_v49 = vshll.u32 %v4978_v28, 16  ;;  %v1541_v45 = vshrl.u32 %v3462_v39, 16 }
 0x1b8   : > { %4008 = vmatprep.subr.bf16.mxu0 %v4243_v44  ;;  %2877 = vmatmul.mubr.bf16.gmra.mrb[44].mxu1 %v1661_v58  ;;  %v1529_v24 = vrot.slane %v1527_v15, 5  ;;  %v1778_v31 = vrot.slane %v3477_v8, 4  ;;  %v1688_v36 = vshrl.u32 %v3477_v8, 16  ;;  %v1691_v30 = vshll.u32 %v3477_v8, 16  ;;  %v3463_v4 = vld [vmem:[%s4647_s23 + $0x88] sm:$0x1f] }
 0x1b9   : > { %2884 = vmatprep.mubr.bf16.mxu1 %v1776_v53  ;;  %v1678_v34 = vsel %vm847_vm1, %v1669_v17, %v1677_v21  ;;  %v1682_v41 = vrot.slane %v1680_v32, 3  ;;  %v1685_v42 = vrot.slane %v1683_v33, 4  ;;  %v1535_v51 = vrot.slane %v1533_v43, 4  ;;  %v5005_v17 = vld [vmem:[%s4647_s23 + $0x90] sm:$0xf0] }
 0x1ba   : > { %v1530_v35 = vor.u32 %v1529_v24, %v1526_v19  ;;  %v1779_v40 = vsel %vm1016_vm0, %v1777_v27, %v1778_v31  ;;  %v1690_v47 = vrot.slane %v1688_v36, 3  ;;  %v1693_v46 = vrot.slane %v1691_v30, 4  ;;  %v3480_v19 = vld [vmem:[%s4647_s23 + $0x90] sm:$0xf8] }
 0x1bb   : > { %4009 = vmatpush3.bf16.msra.mxu0 %v4243_v44  ;;  %v1686_v50 = vor.u32 %v1685_v42, %v1682_v41  ;;  %v1544_v54 = vshll.u32 %v3462_v39, 16  ;;  %v1407_v56 = vsel %vm1016_vm0, %v1405_v20, %v1406_v29  ;;  %v1538_v58 = vrot.slane %v1536_v49, 5 }
 0x1bc   : > { %v1531_v44 = vsel %vm1057_vm2, %v1522_v23, %v1530_v35  ;;  %v1694_v57 = vor.u32 %v1693_v46, %v1690_v47  ;;  %v1408_v59 = vrot.slane %v4978_v28, 4  ;;  %v1543_v61 = vrot.slane %v1541_v45, 4  ;;  %v3491_v47 = vld [vmem:[%s4647_s23 + $0x38] sm:$0x1f] }
 0x1bd   : > { %v1546_v62 = vrot.slane %v1544_v54, 5  ;;  %v1780_v53 = vrot.slane %v4988_v25, 4  ;;  %v1539_v48 = vor.u32 %v1538_v58, %v1535_v51  ;;  %v1409_v2 = vrot.slane %v4819_v37, 4 }
 0x1be   : > { %2788 = vmatmul.mubr.bf16.gmra.mrb[48].mxu0 %v1404_v60  ;;  %v3479_v60 = vld [vmem:[%s4647_s23 + $0x88] sm:$0xf]  ;;  %v1695_v1 = vsel %vm847_vm1, %v1686_v50, %v1694_v57  ;;  %v1697_v3 = vshrl.u32 %v3478_v55, 16  ;;  %v1700_v9 = vshll.u32 %v3478_v55, 16  ;;  %v1550_v15 = vshrl.u32 %v4996_v0, 16 }
 0x1bf   : > { %2795 = vmatprep.mubr.bf16.mxu0 %v1531_v44  ;;  %v1781_v63 = vrot.slane %v3479_v60, 4  ;;  %v1547_v6 = vor.u32 %v1546_v62, %v1543_v61  ;;  %v1705_v11 = vshrl.u32 %v3479_v60, 16  ;;  %v1708_v12 = vshll.u32 %v3479_v60, 16 }
 0x1c0   : > { %2885 = vmatmul.mubr.bf16.gmra.mrb[48].mxu1 %v1678_v34  ;;  %v1699_v14 = vrot.slane %v1697_v3, 3  ;;  %v1553_v16 = vshll.u32 %v4996_v0, 16  ;;  %v1702_v20 = vrot.slane %v1700_v9, 4  ;;  %v1558_v21 = vshrl.u32 %v3463_v4, 16  ;;  %v3481_v34 = vld [vmem:[%s4647_s23 + $0x98] sm:$0xf] }
 0x1c1   : > { %2892 = vmatprep.mubr.bf16.mxu1 %v1779_v40  ;;  %v1782_v7 = vsel %vm1016_vm0, %v1780_v53, %v1781_v63  ;;  %v1548_v37 = vsel %vm1057_vm2, %v1539_v48, %v1547_v6  ;;  %v1707_v8 = vrot.slane %v1705_v11, 3  ;;  %v1710_v23 = vrot.slane %v1708_v12, 4  ;;  %v3490_v40 = vld [vmem:[%s4647_s23 + $0x28] sm:$0x1f] }
 0x1c2   : > { %v1552_v24 = vrot.slane %v1550_v15, 4  ;;  %v1555_v27 = vrot.slane %v1553_v16, 5  ;;  %v1561_v28 = vshll.u32 %v3463_v4, 16  ;;  %v1410_v29 = vsel %vm1016_vm0, %v1408_v59, %v1409_v2  ;;  %v3492_v59 = vld [vmem:[%s4647_s23 + $0x48] sm:$0x1f] }
 0x1c3   : > { %v1703_v31 = vor.u32 %v1702_v20, %v1699_v14  ;;  %v1560_v32 = vrot.slane %v1558_v21, 4  ;;  %v1411_v33 = vrot.slane %v4996_v0, 4  ;;  %v1711_v35 = vor.u32 %v1710_v23, %v1707_v8  ;;  %v3493_v14 = vld [vmem:[%s4647_s23 + $0x58] sm:$0x1f] }
 0x1c4   : > { %v1556_v36 = vor.u32 %v1555_v27, %v1552_v24  ;;  %v1563_v30 = vrot.slane %v1561_v28, 5  ;;  %v1412_v39 = vrot.slane %v4852_v26, 4  ;;  %v1783_v41 = vrot.slane %v5005_v17, 4  ;;  %v3494_v28 = vld [vmem:[%s4647_s23 + $0x68] sm:$0x1f] }
 0x1c5   : > { %v1784_v42 = vrot.slane %v3481_v34, 4  ;;  %v1714_v43 = vshrl.u32 %v3480_v19, 16  ;;  %v1717_v44 = vshll.u32 %v3480_v19, 16  ;;  %v1722_v49 = vshrl.u32 %v3481_v34, 16 }
 0x1c6   : > { %2796 = vmatmul.mubr.bf16.gmra.mrb[52].mxu0 %v1407_v56  ;;  %v1564_v46 = vor.u32 %v1563_v30, %v1560_v32  ;;  %v1725_v50 = vshll.u32 %v3481_v34, 16  ;;  %v1712_v51 = vsel %vm847_vm1, %v1703_v31, %v1711_v35  ;;  %v1803_v55 = vshrl.u32 %v4884_v18, 16 }
 0x1c7   : > { %2803 = vmatprep.mubr.bf16.mxu0 %v1548_v37  ;;  %v1716_v45 = vrot.slane %v1714_v43, 3  ;;  %v1719_v54 = vrot.slane %v1717_v44, 4  ;;  %v1724_v56 = vrot.slane %v1722_v49, 3  ;;  %v1806_v58 = vshll.u32 %v4884_v18, 16 }
 0x1c8   : > { %2893 = vmatmul.mubr.bf16.gmra.mrb[52].mxu1 %v1695_v1  ;;  %v1565_v26 = vsel %vm1057_vm2, %v1556_v36, %v1564_v46  ;;  %v1727_v57 = vrot.slane %v1725_v50, 4  ;;  %v1785_v60 = vsel %vm1016_vm0, %v1783_v41, %v1784_v42  ;;  %v1805_v61 = vrot.slane %v1803_v55, 4  ;;  %v3495_v50 = vld [vmem:[%s4647_s23 + $0x78] sm:$0x1f] }
 0x1c9   : > { %2900 = vmatprep.mubr.bf16.mxu1 %v1782_v7  ;;  %v1811_v62 = vshrl.u32 %v3490_v40, 16  ;;  %v1814_v53 = vshll.u32 %v3490_v40, 16  ;;  %v1413_v63 = vsel %vm1016_vm0, %v1411_v33, %v1412_v39  ;;  %v1720_v0 = vor.u32 %v1719_v54, %v1716_v45 }
 0x1ca   : > { %v1808_v1 = vrot.slane %v1806_v58, 5  ;;  %v1828_v48 = vshrl.u32 %v3491_v47, 16  ;;  %v1831_v4 = vshll.u32 %v3491_v47, 16  ;;  %v1837_v6 = vshrl.u32 %v4917_v22, 16 }
 0x1cb   : > { %v1813_v2 = vrot.slane %v1811_v62, 4  ;;  %v1816_v3 = vrot.slane %v1814_v53, 5  ;;  %v1728_v18 = vor.u32 %v1727_v57, %v1724_v56  ;;  %v1840_v11 = vshll.u32 %v4917_v22, 16 }
 0x1cc   : > { %v1809_v7 = vor.u32 %v1808_v1, %v1805_v61  ;;  %v1830_v9 = vrot.slane %v1828_v48, 4  ;;  %v1833_v15 = vrot.slane %v1831_v4, 5  ;;  %v1839_v16 = vrot.slane %v1837_v6, 4 }
 0x1cd   : > { %v1817_v12 = vor.u32 %v1816_v3, %v1813_v2  ;;  %v1845_v19 = vshrl.u32 %v3492_v59, 16  ;;  %v1842_v37 = vrot.slane %v1840_v11, 5  ;;  %v1848_v20 = vshll.u32 %v3492_v59, 16 }
 0x1ce   : > { %2804 = vmatmul.mubr.bf16.gmra.mrb[56].mxu0 %v1410_v29  ;;  %v1854_v8 = vshrl.u32 %v4931_v52, 16  ;;  %v1857_v24 = vshll.u32 %v4931_v52, 16  ;;  %v1862_v27 = vshrl.u32 %v3493_v14, 16  ;;  %v1729_v29 = vsel %vm847_vm1, %v1720_v0, %v1728_v18  ;;  %v3497_v18 = vld [vmem:[%s4647_s23 + $0x98] sm:$0x1f] }
 0x1cf   : > { %2811 = vmatprep.mubr.bf16.mxu0 %v1565_v26  ;;  %v1818_v21 = vsel %vm1057_vm2, %v1809_v7, %v1817_v12  ;;  %v1847_v23 = vrot.slane %v1845_v19, 4  ;;  %v1826_v22 = vor.u32 %v4910_v13, %v4906_v5  ;;  %v1834_v31 = vor.u32 %v1833_v15, %v1830_v9 }
 0x1d0   : > { %2901 = vmatmul.mubr.bf16.gmra.mrb[56].mxu1 %v1712_v51  ;;  %v1850_v32 = vrot.slane %v1848_v20, 5  ;;  %v1843_v33 = vor.u32 %v1842_v37, %v1839_v16  ;;  %v1865_v34 = vshll.u32 %v3493_v14, 16  ;;  %v1871_v35 = vshrl.u32 %v4952_v38, 16  ;;  %v3496_v51 = vld [vmem:[%s4647_s23 + $0x88] sm:$0x1f]  ;;  %s3584_s23 = sshll.u32 %s4334_s28, 5 }
 0x1d1   : > { %2908 = vmatprep.mubr.bf16.mxu1 %v1785_v60  ;;  %v1856_v30 = vrot.slane %v1854_v8, 4  ;;  %v1874_v52 = vshll.u32 %v4952_v38, 16  ;;  %v1879_v39 = vshrl.u32 %v3494_v28, 16  ;;  %v1859_v40 = vrot.slane %v1857_v24, 5  ;;  %s3302_s1 = sadd.s32 %s3594_s12, %s3584_s23  ;;  %s3305_s28 = sshll.u32 %s4473_s13, 4  ;;  %s5240_s28 = int_to_ptr.vmem [resolvable:$true] %s3305_s28 }
 0x1d2   : > { %v1851_v36 = vor.u32 %v1850_v32, %v1847_v23  ;;  %v1864_v41 = vrot.slane %v1862_v27, 4  ;;  %v1867_v42 = vrot.slane %v1865_v34, 5  ;;  %v1882_v43 = vshll.u32 %v3494_v28, 16  ;;  %v4248_v32 = vld [vmem:[%s5302_s3 + $0x20] sm:$0xff]   ;;  %s3585_s27 = sshll.u32 %s3302_s1, 7  ;;  %s4252_s18 = scalar_lea.vmem %s5240_s28, 2048 }
 0x1d3   : > { %v1835_v5 = vsel %vm1057_vm2, %v1826_v22, %v1834_v31  ;;  %v1873_v13 = vrot.slane %v1871_v35, 4  ;;  %v1876_v44 = vrot.slane %v1874_v52, 5  ;;  %v1881_v46 = vrot.slane %v1879_v39, 4  ;;  %v4246_v22 = vld [vmem:[%s5302_s3 + $0x10] sm:$0xff]   ;;  %v4247_v31 = vld [vmem:[%s5302_s3 + $0x18] sm:$0xff]   ;;  %v4249_v39 = vld [vmem:[%s5302_s3 + $0x28] sm:$0xff]   ;;  %s5238_s17 = scalar_lea.hbm %s5306_s7, %s3585_s27  ;;  %p4253_p0 = scmp.ne.s32.totalorder %s5240_s28, %s4252_s18 }
 0x1d4   : > { %v1852_v47 = vsel %vm1057_vm2, %v1843_v33, %v1851_v36  ;;  %v1884_v49 = vrot.slane %v1882_v43, 5  ;;  %v1860_v45 = vor.u32 %v1859_v40, %v1856_v30  ;;  %v1868_v54 = vor.u32 %v1867_v42, %v1864_v41  ;;  %v5069_v30 = vld [vmem:[%s5304_s5] ss:$0 sm:$0xff] }
 0x1d5   : > { %v1888_v38 = vshrl.u32 %v4971_v10, 16  ;;  %v1891_v55 = vshll.u32 %v4971_v10, 16  ;;  %v1877_v26 = vor.u32 %v1876_v44, %v1873_v13  ;;  %v1896_v56 = vshrl.u32 %v3495_v50, 16  ;;  %p4254_p1 = pnand %p4253_p0, %p4443_p3 }
 0x1d6   : > { %2812 = vmatmul.mubr.bf16.gmra.mrb[60].mxu0 %v1413_v63  ;;  %v1899_v57 = vshll.u32 %v3495_v50, 16  ;;  %v1905_v58 = vshrl.u32 %v4988_v25, 16  ;;  %v1885_v59 = vor.u32 %v1884_v49, %v1881_v46  ;;  %v1908_v60 = vshll.u32 %v4988_v25, 16 }
 0x1d7   : > { %4010 = vmatprep.mubr.bf16.mxu0 %v1818_v21  ;;  %v1913_v61 = vshrl.u32 %v3496_v51, 16  ;;  %v1916_v62 = vshll.u32 %v3496_v51, 16  ;;  %v1890_v53 = vrot.slane %v1888_v38, 4  ;;  %v1893_v63 = vrot.slane %v1891_v55, 5  ;;  %p4255_p2 = pneg %p4254_p1 }
 0x1d8   : > { %2909 = vmatmul.mubr.bf16.gmra.mrb[60].mxu1 %v1729_v29  ;;  %v1869_v0 = vsel %vm1057_vm2, %v1860_v45, %v1868_v54  ;;  %v1898_v1 = vrot.slane %v1896_v56, 4  ;;  %v1901_v48 = vrot.slane %v1899_v57, 5  ;;  %v1907_v2 = vrot.slane %v1905_v58, 4  ;;  %v4245_v29 = vld [vmem:[%s5302_s3 + $0x8] sm:$0xff]   ;;  %v4250_v45 = vld [vmem:[%s5302_s3 + $0x30] sm:$0xff]  }
 0x1d9   : > { %v1886_v10 = vsel %vm1057_vm2, %v1877_v26, %v1885_v59  ;;  %v1910_v3 = vrot.slane %v1908_v60, 5  ;;  %v1915_v4 = vrot.slane %v1913_v61, 4  ;;  %v1918_v6 = vrot.slane %v1916_v62, 5 }
 0x1da   : > { %v1894_v7 = vor.u32 %v1893_v63, %v1890_v53  ;;  %v1922_v9 = vshrl.u32 %v5005_v17, 16  ;;  %v1902_v25 = vor.u32 %v1901_v48, %v1898_v1  ;;  %v1925_v11 = vshll.u32 %v5005_v17, 16  ;;  %v4244_v17 = vld [vmem:[%s5302_s3] sm:$0xff]  }
 0x1db   : > { %v1930_v14 = vshrl.u32 %v3497_v18, 16  ;;  %v1933_v12 = vshll.u32 %v3497_v18, 16  ;;  %v1911_v15 = vor.u32 %v1910_v3, %v1907_v2  ;;  %v1919_v16 = vor.u32 %v1918_v6, %v1915_v4  ;;  %4026 = vmatprep.subr.bf16.mxu1 %v4244_v17  ;;  %v4251_v3 = vld [vmem:[%s5302_s3 + $0x38] sm:$0xff]  }
 0x1dc   : > { %v1924_v19 = vrot.slane %v1922_v9, 4  ;;  %v1903_v37 = vsel %vm1057_vm2, %v1894_v7, %v1902_v25  ;;  %v1927_v20 = vrot.slane %v1925_v11, 5  ;;  %4027 = vmatpush3.bf16.msra.mxu1 %v4244_v17 }
 0x1dd   : > { %v1932_v8 = vrot.slane %v1930_v14, 4  ;;  %v1935_v21 = vrot.slane %v1933_v12, 5  ;;  %v1920_v23 = vsel %vm1057_vm2, %v1911_v15, %v1919_v16  ;;  %4028 = vmatprep.subr.bf16.mxu1 %v4245_v29 }
 0x1de   : > { %4011 = vmatmul.mubr.bf16.vlgmr.msra.gmra.mrb[64].mxu0 %v1835_v5  ;;  %v1928_v24 = vor.u32 %v1927_v20, %v1924_v19 }
 0x1df   : > { %4014 = vmatprep.mubr.bf16.mxu0 %v1852_v47  ;;  %v1936_v27 = vor.u32 %v1935_v21, %v1932_v8 }
 0x1e0   : > { %4029 = vmatpush3.bf16.msra.mxu1 %v4245_v29 }
 0x1e1   : > { %v1937_v28 = vsel %vm1057_vm2, %v1928_v24, %v1936_v27  ;;  %4030 = vmatprep.subr.bf16.mxu1 %v4246_v22 }
 0x1e4   : > { %4031 = vmatpush3.bf16.msra.mxu1 %v4246_v22 }
 0x1e5   : > { %4032 = vmatprep.subr.bf16.mxu1 %v4247_v31 }
 0x1e6   : > { %4015 = vmatmul.mubr.bf16.gmra.mrb[68].mxu0 %v1869_v0 }
 0x1e7   : > { %4018 = vmatprep.mubr.bf16.mxu0 %v1886_v10 }
 0x1e8   : > { %4033 = vmatpush3.bf16.msra.mxu1 %v4247_v31 }
 0x1e9   : > { %4034 = vmatprep.subr.bf16.mxu1 %v4248_v32 }
 0x1ec   : > { %4035 = vmatpush3.bf16.msra.mxu1 %v4248_v32 }
 0x1ed   : > { %4036 = vmatprep.subr.bf16.mxu1 %v4249_v39 }
 0x1ee   : > { %4019 = vmatmul.mubr.bf16.gmra.mrb[72].mxu0 %v1903_v37 }
 0x1ef   : > { %4022 = vmatprep.mubr.bf16.mxu0 %v1920_v23 }
 0x1f0   : > { %4037 = vmatpush3.bf16.msra.mxu1 %v4249_v39 }
 0x1f1   : > { %4038 = vmatprep.subr.bf16.mxu1 %v4250_v45 }
 0x1f4   : > { %4039 = vmatpush3.bf16.msra.mxu1 %v4250_v45 }
 0x1f5   : > { %4040 = vmatprep.subr.bf16.mxu1 %v4251_v3 }
 0x1f6   : > { %4023 = vmatmul.mubr.bf16.gmra.mrb[76].mxu0 %v1937_v28 }
 0x1f8   : > { %4041 = vmatpush3.bf16.msra.mxu1 %v4251_v3 }
 0x231   : > { %v3674_v33 = vpop.f32.mrb[0].mxu0 }
 0x232   : > { %v3675_v34 = vpop.f32.mrb[1].mxu0 }
 0x233   : > { %v3676_v35 = vadd.f32 %v3675_v34, %v3674_v33  ;;  %v3677_v36 = vpop.f32.mrb[2].mxu0  ;;  %v3738_v42 = vpop.f32.mrb[0].mxu1 }
 0x234   : > { %v3678_v52 = vpop.f32.mrb[3].mxu0  ;;  %v3739_v43 = vpop.f32.mrb[1].mxu1 }
 0x235   : > { %v3679_v40 = vadd.f32 %v3678_v52, %v3677_v36  ;;  %v2564_v41 = vadd.f32 %v3676_v35, %v5069_v30  ;;  %v3740_v13 = vadd.f32 %v3739_v43, %v3738_v42  ;;  %v3741_v44 = vpop.f32.mrb[2].mxu1 }
 0x236   : > { %v3742_v47 = vpop.f32.mrb[3].mxu1 }
 0x237   : > { %v2567_v5 = vadd.f32 %v3679_v40, %v5069_v30  ;;  %v5076_v46 = vadd.f32 %v3740_v13, %v2564_v41  ;;  %v3743_v49 = vadd.f32 %v3742_v47, %v3741_v44 }
 0x239   : > { %v3680_v50 = vpop.f32.mrb[4].mxu0  ;;  %v5081_v54 = vadd.f32 %v3743_v49, %v2567_v5 }
 0x23a   : > { %v3681_v51 = vpop.f32.mrb[5].mxu0 }
 0x23b   : > { %v3682_v38 = vadd.f32 %v3681_v51, %v3680_v50  ;;  %v3683_v55 = vpop.f32.mrb[6].mxu0  ;;  %v3744_v58 = vpop.f32.mrb[4].mxu1 }
 0x23c   : > { %v3684_v26 = vpop.f32.mrb[7].mxu0  ;;  %v3745_v59 = vpop.f32.mrb[5].mxu1 }
 0x23d   : > { %v3685_v56 = vadd.f32 %v3684_v26, %v3683_v55  ;;  %v2572_v57 = vadd.f32 %v3682_v38, %v5069_v30  ;;  %v3746_v61 = vadd.f32 %v3745_v59, %v3744_v58  ;;  %v3747_v62 = vpop.f32.mrb[6].mxu1 }
 0x23e   : > { %v3748_v53 = vpop.f32.mrb[7].mxu1 }
 0x23f   : > { %v2575_v60 = vadd.f32 %v3685_v56, %v5069_v30  ;;  %v5085_v0 = vadd.f32 %v3746_v61, %v2572_v57  ;;  %v3749_v1 = vadd.f32 %v3748_v53, %v3747_v62 }
 0x241   : > { %v3686_v63 = vpop.f32.mrb[8].mxu0  ;;  %v5090_v4 = vadd.f32 %v3749_v1, %v2575_v60 }
 0x242   : > { %v3687_v48 = vpop.f32.mrb[9].mxu0 }
 0x243   : > { %v3688_v2 = vadd.f32 %v3687_v48, %v3686_v63  ;;  %v3689_v10 = vpop.f32.mrb[10].mxu0  ;;  %v3750_v9 = vpop.f32.mrb[8].mxu1 }
 0x244   : > { %v3690_v6 = vpop.f32.mrb[11].mxu0  ;;  %v3751_v25 = vpop.f32.mrb[9].mxu1 }
 0x245   : > { %v3691_v18 = vadd.f32 %v3690_v6, %v3689_v10  ;;  %v2580_v7 = vadd.f32 %v3688_v2, %v5069_v30  ;;  %v3752_v14 = vadd.f32 %v3751_v25, %v3750_v9  ;;  %v3753_v12 = vpop.f32.mrb[10].mxu1 }
 0x246   : > { %v3754_v15 = vpop.f32.mrb[11].mxu1 }
 0x247   : > { %v2583_v11 = vadd.f32 %v3691_v18, %v5069_v30  ;;  %v5094_v19 = vadd.f32 %v3752_v14, %v2580_v7  ;;  %v3755_v37 = vadd.f32 %v3754_v15, %v3753_v12 }
 0x249   : > { %v3692_v16 = vpop.f32.mrb[12].mxu0  ;;  %v5096_v23 = vadd.f32 %v3755_v37, %v2583_v11 }
 0x24a   : > { %v3693_v20 = vpop.f32.mrb[13].mxu0 }
 0x24b   : > { %v3694_v8 = vadd.f32 %v3693_v20, %v3692_v16  ;;  %v3695_v21 = vpop.f32.mrb[14].mxu0  ;;  %v3756_v17 = vpop.f32.mrb[12].mxu1 }
 0x24c   : > { %v3696_v24 = vpop.f32.mrb[15].mxu0  ;;  %v3757_v29 = vpop.f32.mrb[13].mxu1 }
 0x24d   : > { %v3697_v27 = vadd.f32 %v3696_v24, %v3695_v21  ;;  %v2588_v28 = vadd.f32 %v3694_v8, %v5069_v30  ;;  %v3758_v31 = vadd.f32 %v3757_v29, %v3756_v17  ;;  %v3759_v32 = vpop.f32.mrb[14].mxu1 }
 0x24e   : > { %v3760_v33 = vpop.f32.mrb[15].mxu1 }
 0x24f   : > { %v2591_v22 = vadd.f32 %v3697_v27, %v5069_v30  ;;  %v5100_v35 = vadd.f32 %v3758_v31, %v2588_v28  ;;  %v3761_v36 = vadd.f32 %v3760_v33, %v3759_v32 }
 0x251   : > { %v3698_v34 = vpop.f32.mrb[16].mxu0  ;;  %v5102_v41 = vadd.f32 %v3761_v36, %v2591_v22 }
 0x252   : > { %v3699_v52 = vpop.f32.mrb[17].mxu0 }
 0x253   : > { %v3700_v39 = vadd.f32 %v3699_v52, %v3698_v34  ;;  %v3701_v40 = vpop.f32.mrb[18].mxu0  ;;  %v3762_v13 = vpop.f32.mrb[16].mxu1 }
 0x254   : > { %v3702_v42 = vpop.f32.mrb[19].mxu0  ;;  %v3763_v44 = vpop.f32.mrb[17].mxu1 }
 0x255   : > { %v3703_v43 = vadd.f32 %v3702_v42, %v3701_v40  ;;  %v2596_v5 = vadd.f32 %v3700_v39, %v5069_v30  ;;  %v3764_v49 = vadd.f32 %v3763_v44, %v3762_v13  ;;  %v3765_v50 = vpop.f32.mrb[18].mxu1 }
 0x256   : > { %v3766_v51 = vpop.f32.mrb[19].mxu1 }
 0x257   : > { %v2599_v47 = vadd.f32 %v3703_v43, %v5069_v30  ;;  %v5106_v38 = vadd.f32 %v3764_v49, %v2596_v5  ;;  %v3767_v55 = vadd.f32 %v3766_v51, %v3765_v50 }
 0x259   : > { %v3704_v45 = vpop.f32.mrb[20].mxu0  ;;  %v5108_v58 = vadd.f32 %v3767_v55, %v2599_v47 }
 0x25a   : > { %v3705_v26 = vpop.f32.mrb[21].mxu0 }
 0x25b   : > { %v3706_v56 = vadd.f32 %v3705_v26, %v3704_v45  ;;  %v3707_v57 = vpop.f32.mrb[22].mxu0  ;;  %v3768_v62 = vpop.f32.mrb[20].mxu1 }
 0x25c   : > { %v3708_v59 = vpop.f32.mrb[23].mxu0  ;;  %v3769_v53 = vpop.f32.mrb[21].mxu1 }
 0x25d   : > { %v3709_v60 = vadd.f32 %v3708_v59, %v3707_v57  ;;  %v2604_v61 = vadd.f32 %v3706_v56, %v5069_v30  ;;  %v3770_v1 = vadd.f32 %v3769_v53, %v3768_v62  ;;  %v3771_v48 = vpop.f32.mrb[22].mxu1 }
 0x25e   : > { %v3772_v2 = vpop.f32.mrb[23].mxu1 }
 0x25f   : > { %v2607_v63 = vadd.f32 %v3709_v60, %v5069_v30  ;;  %v5112_v10 = vadd.f32 %v3770_v1, %v2604_v61  ;;  %v3773_v3 = vadd.f32 %v3772_v2, %v3771_v48 }
 0x261   : > { %v3710_v6 = vpop.f32.mrb[24].mxu0  ;;  %v5114_v7 = vadd.f32 %v3773_v3, %v2607_v63 }
 0x262   : > { %v3711_v18 = vpop.f32.mrb[25].mxu0 }
 0x263   : > { %v3712_v9 = vadd.f32 %v3711_v18, %v3710_v6  ;;  %v3713_v25 = vpop.f32.mrb[26].mxu0  ;;  %v3774_v15 = vpop.f32.mrb[24].mxu1 }
 0x264   : > { %v3714_v11 = vpop.f32.mrb[27].mxu0  ;;  %v3775_v16 = vpop.f32.mrb[25].mxu1 }
 0x265   : > { %v3715_v14 = vadd.f32 %v3714_v11, %v3713_v25  ;;  %v2612_v12 = vadd.f32 %v3712_v9, %v5069_v30  ;;  %v3776_v20 = vadd.f32 %v3775_v16, %v3774_v15  ;;  %v3777_v8 = vpop.f32.mrb[26].mxu1 }
 0x266   : > { %v3778_v21 = vpop.f32.mrb[27].mxu1 }
 0x267   : > { %v2615_v37 = vadd.f32 %v3715_v14, %v5069_v30  ;;  %v5118_v24 = vadd.f32 %v3776_v20, %v2612_v12  ;;  %v3779_v27 = vadd.f32 %v3778_v21, %v3777_v8 }
 0x269   : > { %v3716_v28 = vpop.f32.mrb[28].mxu0  ;;  %v5120_v17 = vadd.f32 %v3779_v27, %v2615_v37 }
 0x26a   : > { %v3717_v29 = vpop.f32.mrb[29].mxu0 }
 0x26b   : > { %v3718_v22 = vadd.f32 %v3717_v29, %v3716_v28  ;;  %v3719_v31 = vpop.f32.mrb[30].mxu0  ;;  %v3780_v36 = vpop.f32.mrb[28].mxu1 }
 0x26c   : > { %v3720_v32 = vpop.f32.mrb[31].mxu0  ;;  %v3781_v52 = vpop.f32.mrb[29].mxu1 }
 0x26d   : > { %v3721_v33 = vadd.f32 %v3720_v32, %v3719_v31  ;;  %v2620_v34 = vadd.f32 %v3718_v22, %v5069_v30  ;;  %v3782_v40 = vadd.f32 %v3781_v52, %v3780_v36  ;;  %v3783_v42 = vpop.f32.mrb[30].mxu1 }
 0x26e   : > { %v3784_v43 = vpop.f32.mrb[31].mxu1 }
 0x26f   : > { %v2623_v39 = vadd.f32 %v3721_v33, %v5069_v30  ;;  %v5124_v5 = vadd.f32 %v3782_v40, %v2620_v34  ;;  %v3785_v13 = vadd.f32 %v3784_v43, %v3783_v42 }
 0x271   : > { %v3802_v44 = vpop.f32.mrb[32].mxu0  ;;  %v5126_v49 = vadd.f32 %v3785_v13, %v2623_v39 }
 0x272   : > { %v3803_v47 = vpop.f32.mrb[33].mxu0 }
 0x273   : > { %v3804_v50 = vadd.f32 %v3803_v47, %v3802_v44  ;;  %v3805_v51 = vpop.f32.mrb[34].mxu0  ;;  %v3866_v26 = vpop.f32.mrb[32].mxu1 }
 0x274   : > { %v3806_v45 = vpop.f32.mrb[35].mxu0  ;;  %v3867_v57 = vpop.f32.mrb[33].mxu1 }
 0x275   : > { %v2758_v55 = vadd.f32 %v3804_v50, %v5076_v46  ;;  %v3807_v56 = vadd.f32 %v3806_v45, %v3805_v51  ;;  %v3868_v59 = vadd.f32 %v3867_v57, %v3866_v26  ;;  %v3869_v60 = vpop.f32.mrb[34].mxu1 }
 0x276   : > { %v3870_v61 = vpop.f32.mrb[35].mxu1 }
 0x277   : > { %v2761_v30 = vadd.f32 %v3807_v56, %v5081_v54  ;;  %v3871_v62 = vadd.f32 %v3870_v61, %v3869_v60  ;;  %v5130_v63 = vadd.f32 %v3868_v59, %v2758_v55 }
 0x279   : > { %v3808_v53 = vpop.f32.mrb[36].mxu0  ;;  %v5132_v3 = vadd.f32 %v3871_v62, %v2761_v30 }
 0x27a   : > { %v3809_v1 = vpop.f32.mrb[37].mxu0 }
 0x27b   : > { %v3810_v48 = vadd.f32 %v3809_v1, %v3808_v53  ;;  %v3811_v2 = vpop.f32.mrb[38].mxu0  ;;  %v3872_v18 = vpop.f32.mrb[36].mxu1 }
 0x27c   : > { %v3812_v6 = vpop.f32.mrb[39].mxu0  ;;  %v3873_v25 = vpop.f32.mrb[37].mxu1 }
 0x27d   : > { %v2766_v46 = vadd.f32 %v3810_v48, %v5085_v0  ;;  %v3813_v9 = vadd.f32 %v3812_v6, %v3811_v2  ;;  %v3874_v11 = vadd.f32 %v3873_v25, %v3872_v18  ;;  %v3875_v14 = vpop.f32.mrb[38].mxu1 }
 0x27e   : > { %v3876_v12 = vpop.f32.mrb[39].mxu1 }
 0x27f   : > { %v2769_v54 = vadd.f32 %v3813_v9, %v5090_v4  ;;  %v3877_v15 = vadd.f32 %v3876_v12, %v3875_v14  ;;  %v5136_v37 = vadd.f32 %v3874_v11, %v2766_v46 }
 0x281   : > { %v3814_v16 = vpop.f32.mrb[40].mxu0  ;;  %v5138_v27 = vadd.f32 %v3877_v15, %v2769_v54 }
 0x282   : > { %v3815_v20 = vpop.f32.mrb[41].mxu0 }
 0x283   : > { %v3816_v8 = vadd.f32 %v3815_v20, %v3814_v16  ;;  %v3817_v21 = vpop.f32.mrb[42].mxu0  ;;  %v3878_v29 = vpop.f32.mrb[40].mxu1 }
 0x284   : > { %v3818_v28 = vpop.f32.mrb[43].mxu0  ;;  %v3879_v31 = vpop.f32.mrb[41].mxu1 }
 0x285   : > { %v2774_v0 = vadd.f32 %v3816_v8, %v5094_v19  ;;  %v3819_v22 = vadd.f32 %v3818_v28, %v3817_v21  ;;  %v3880_v32 = vadd.f32 %v3879_v31, %v3878_v29  ;;  %v3881_v33 = vpop.f32.mrb[42].mxu1 }
 0x286   : > { %v3882_v34 = vpop.f32.mrb[43].mxu1 }
 0x287   : > { %v2777_v4 = vadd.f32 %v3819_v22, %v5096_v23  ;;  %v3883_v36 = vadd.f32 %v3882_v34, %v3881_v33  ;;  %v5142_v39 = vadd.f32 %v3880_v32, %v2774_v0 }
 0x289   : > { %v3820_v52 = vpop.f32.mrb[44].mxu0  ;;  %v5144_v13 = vadd.f32 %v3883_v36, %v2777_v4 }
 0x28a   : > { %v3821_v40 = vpop.f32.mrb[45].mxu0 }
 0x28b   : > { %v3822_v42 = vadd.f32 %v3821_v40, %v3820_v52  ;;  %v3823_v43 = vpop.f32.mrb[46].mxu0  ;;  %v3884_v47 = vpop.f32.mrb[44].mxu1 }
 0x28c   : > { %v3824_v44 = vpop.f32.mrb[47].mxu0  ;;  %v3885_v51 = vpop.f32.mrb[45].mxu1 }
 0x28d   : > { %v2782_v19 = vadd.f32 %v3822_v42, %v5100_v35  ;;  %v3825_v50 = vadd.f32 %v3824_v44, %v3823_v43  ;;  %v3886_v45 = vadd.f32 %v3885_v51, %v3884_v47  ;;  %v3887_v55 = vpop.f32.mrb[46].mxu1 }
 0x28e   : > { %v3888_v26 = vpop.f32.mrb[47].mxu1 }
 0x28f   : > { %v2785_v23 = vadd.f32 %v3825_v50, %v5102_v41  ;;  %v3889_v56 = vadd.f32 %v3888_v26, %v3887_v55  ;;  %v5148_v30 = vadd.f32 %v3886_v45, %v2782_v19 }
 0x291   : > { %v3826_v57 = vpop.f32.mrb[48].mxu0  ;;  %v5150_v62 = vadd.f32 %v3889_v56, %v2785_v23 }
 0x292   : > { %v3827_v59 = vpop.f32.mrb[49].mxu0 }
 0x293   : > { %v3828_v60 = vadd.f32 %v3827_v59, %v3826_v57  ;;  %v3829_v61 = vpop.f32.mrb[50].mxu0  ;;  %v3890_v1 = vpop.f32.mrb[48].mxu1 }
 0x294   : > { %v3830_v53 = vpop.f32.mrb[51].mxu0  ;;  %v3891_v2 = vpop.f32.mrb[49].mxu1 }
 0x295   : > { %v2790_v35 = vadd.f32 %v3828_v60, %v5106_v38  ;;  %v3831_v48 = vadd.f32 %v3830_v53, %v3829_v61  ;;  %v3892_v6 = vadd.f32 %v3891_v2, %v3890_v1  ;;  %v3893_v46 = vpop.f32.mrb[50].mxu1 }
 0x296   : > { %v3894_v18 = vpop.f32.mrb[51].mxu1 }
 0x297   : > { %v2793_v41 = vadd.f32 %v3831_v48, %v5108_v58  ;;  %v3895_v9 = vadd.f32 %v3894_v18, %v3893_v46  ;;  %v5154_v54 = vadd.f32 %v3892_v6, %v2790_v35 }
 0x299   : > { %v3832_v25 = vpop.f32.mrb[52].mxu0  ;;  %v5156_v15 = vadd.f32 %v3895_v9, %v2793_v41 }
 0x29a   : > { %v3833_v11 = vpop.f32.mrb[53].mxu0 }
 0x29b   : > { %v3834_v14 = vadd.f32 %v3833_v11, %v3832_v25  ;;  %v3835_v12 = vpop.f32.mrb[54].mxu0  ;;  %v3896_v20 = vpop.f32.mrb[52].mxu1 }
 0x29c   : > { %v3836_v16 = vpop.f32.mrb[55].mxu0  ;;  %v3897_v21 = vpop.f32.mrb[53].mxu1 }
 0x29d   : > { %v2798_v38 = vadd.f32 %v3834_v14, %v5112_v10  ;;  %v3837_v8 = vadd.f32 %v3836_v16, %v3835_v12  ;;  %v3898_v28 = vadd.f32 %v3897_v21, %v3896_v20  ;;  %v3899_v0 = vpop.f32.mrb[54].mxu1 }
 0x29e   : > { %v3900_v29 = vpop.f32.mrb[55].mxu1 }
 0x29f   : > { %v2801_v58 = vadd.f32 %v3837_v8, %v5114_v7  ;;  %v3901_v22 = vadd.f32 %v3900_v29, %v3899_v0  ;;  %v5160_v4 = vadd.f32 %v3898_v28, %v2798_v38 }
 0x2a1   : > { %v3838_v31 = vpop.f32.mrb[56].mxu0  ;;  %v5162_v36 = vadd.f32 %v3901_v22, %v2801_v58 }
 0x2a2   : > { %v3839_v32 = vpop.f32.mrb[57].mxu0 }
 0x2a3   : > { %v3840_v33 = vadd.f32 %v3839_v32, %v3838_v31  ;;  %v3841_v34 = vpop.f32.mrb[58].mxu0  ;;  %v3902_v40 = vpop.f32.mrb[56].mxu1 }
 0x2a4   : > { %v3842_v52 = vpop.f32.mrb[59].mxu0  ;;  %v3903_v43 = vpop.f32.mrb[57].mxu1 }
 0x2a5   : > { %v2806_v10 = vadd.f32 %v3840_v33, %v5118_v24  ;;  %v3843_v42 = vadd.f32 %v3842_v52, %v3841_v34  ;;  %v3904_v44 = vadd.f32 %v3903_v43, %v3902_v40  ;;  %v3905_v19 = vpop.f32.mrb[58].mxu1 }
 0x2a6   : > { %v3906_v47 = vpop.f32.mrb[59].mxu1 }
 0x2a7   : > { %v2809_v7 = vadd.f32 %v3843_v42, %v5120_v17  ;;  %v3907_v50 = vadd.f32 %v3906_v47, %v3905_v19  ;;  %v5166_v23 = vadd.f32 %v3904_v44, %v2806_v10 }
 0x2a9   : > { %v3844_v51 = vpop.f32.mrb[60].mxu0  ;;  %v5168_v56 = vadd.f32 %v3907_v50, %v2809_v7 }
 0x2aa   : > { %v3845_v45 = vpop.f32.mrb[61].mxu0 }
 0x2ab   : > { %v3846_v55 = vadd.f32 %v3845_v45, %v3844_v51  ;;  %v3847_v26 = vpop.f32.mrb[62].mxu0  ;;  %v3908_v59 = vpop.f32.mrb[60].mxu1 }
 0x2ac   : > { %v3848_v57 = vpop.f32.mrb[63].mxu0  ;;  %v3909_v61 = vpop.f32.mrb[61].mxu1 }
 0x2ad   : > { %v2814_v24 = vadd.f32 %v3846_v55, %v5124_v5  ;;  %v3849_v60 = vadd.f32 %v3848_v57, %v3847_v26  ;;  %v3910_v53 = vadd.f32 %v3909_v61, %v3908_v59  ;;  %v3911_v35 = vpop.f32.mrb[62].mxu1 }
 0x2ae   : > { %v3912_v1 = vpop.f32.mrb[63].mxu1 }
 0x2af   : > { %v2817_v17 = vadd.f32 %v3849_v60, %v5126_v49  ;;  %v3913_v48 = vadd.f32 %v3912_v1, %v3911_v35  ;;  %v2911_v41 = vadd.f32 %v3910_v53, %v2814_v24  ;;  %v3596_v53 = vld [vmem:[%s5188_s21] sm:$0xff]  }
 0x2b1   : > { %v4012_v2 = vpop.f32.mrb[64].mxu0  ;;  %v2914_v25 = vadd.f32 %v3913_v48, %v2817_v17  ;;  %v3597_v48 = vunpack.c.l.bf16 %v3596_v53 }
 0x2b2   : > { %v2960_v6 = vadd.f32 %v4012_v2, %v5136_v37  ;;  %v2951_v46 = vpop.f32.mrb[65].mxu0 }
 0x2b3   : > { %v2952_v18 = vadd.f32 %v2951_v46, %v5130_v63  ;;  %v4013_v9 = vpop.f32.mrb[66].mxu0 }
 0x2b4   : > { %v2963_v5 = vadd.f32 %v4013_v9, %v5138_v27  ;;  %v2954_v11 = vpop.f32.mrb[67].mxu0  ;;  %v3016_v12 = vmax.f32 %v2960_v6, 0.0  ;;  %v3598_v9 = vunpack.c.h.bf16 %v3596_v53 }
 0x2b5   : > { %v2955_v14 = vadd.f32 %v2954_v11, %v5132_v3  ;;  %v3014_v16 = vmax.f32 %v2952_v18, 0.0 }
 0x2b6   : > { %v3017_v49 = vmax.f32 %v2963_v5, 0.0 }
 0x2b7   : > { %v3015_v38 = vmax.f32 %v2955_v14, 0.0 }
 0x2b8   : > { %v3031_v20 = vpack.c.bf16 %v3017_v49, %v3016_v12  ;;  %v3629_v49 = vld [vmem:[%s5188_s21 + $0x18] sm:$0xff]  }
 0x2b9   : > { %v3030_v8 = vpack.c.bf16 %v3015_v38, %v3014_v16  ;;  %v4016_v21 = vpop.f32.mrb[68].mxu0 }
 0x2ba   : > { %v2976_v58 = vadd.f32 %v4016_v21, %v5148_v30  ;;  %v2967_v37 = vpop.f32.mrb[69].mxu0 }
 0x2bb   : > { %v2968_v28 = vadd.f32 %v2967_v37, %v5142_v39  ;;  %v4017_v63 = vpop.f32.mrb[70].mxu0  ;;  %4042 = vmatprep.mubr.bf16.mxu1 %v3030_v8  ;;  %v3609_v37 = vunpack.c.l.bf16 %v3629_v49 }
 0x2bc   : > { %v2979_v0 = vadd.f32 %v4017_v63, %v5150_v62  ;;  %v2970_v27 = vpop.f32.mrb[71].mxu0  ;;  %4043 = vmatmul.mubr.bf16.vlgmr.msra.gmra.mrb[64].mxu1 %v3031_v20  ;;  %v3020_v29 = vmax.f32 %v2976_v58, 0.0  ;;  %v3628_v20 = vld [vmem:[%s5188_s21 + $0x10] sm:$0xff]  }
 0x2bd   : > { %v2971_v3 = vadd.f32 %v2970_v27, %v5144_v13  ;;  %v3018_v31 = vmax.f32 %v2968_v28, 0.0 }
 0x2be   : > { %v3021_v22 = vmax.f32 %v2979_v0, 0.0  ;;  %v3605_v0 = vunpack.c.l.bf16 %v3628_v20 }
 0x2bf   : > { %v3019_v32 = vmax.f32 %v2971_v3, 0.0 }
 0x2c0   : > { %v3033_v33 = vpack.c.bf16 %v3021_v22, %v3020_v29  ;;  %v3610_v29 = vunpack.c.h.bf16 %v3629_v49 }
 0x2c1   : > { %v3032_v34 = vpack.c.bf16 %v3019_v32, %v3018_v31  ;;  %v4020_v52 = vpop.f32.mrb[72].mxu0  ;;  %v3606_v32 = vunpack.c.h.bf16 %v3628_v20 }
 0x2c2   : > { %v2992_v30 = vadd.f32 %v4020_v52, %v5160_v4  ;;  %v2983_v10 = vpop.f32.mrb[73].mxu0 }
 0x2c3   : > { %v2984_v39 = vadd.f32 %v2983_v10, %v5154_v54  ;;  %v4021_v40 = vpop.f32.mrb[74].mxu0  ;;  %4046 = vmatprep.mubr.bf16.mxu1 %v3032_v34 }
 0x2c4   : > { %v2995_v62 = vadd.f32 %v4021_v40, %v5162_v36  ;;  %v2986_v42 = vpop.f32.mrb[75].mxu0  ;;  %4047 = vmatmul.mubr.bf16.gmra.mrb[68].mxu1 %v3033_v33  ;;  %v3024_v43 = vmax.f32 %v2992_v30, 0.0 }
 0x2c5   : > { %v2987_v13 = vadd.f32 %v2986_v42, %v5156_v15  ;;  %v3022_v44 = vmax.f32 %v2984_v39, 0.0  ;;  %v3631_v39 = vld [vmem:[%s5188_s21 + $0x28] sm:$0xff]   ;;  %v3630_v42 = vld [vmem:[%s5188_s21 + $0x20] sm:$0xff]  }
 0x2c6   : > { %v3025_v7 = vmax.f32 %v2995_v62, 0.0 }
 0x2c7   : > { %v3023_v19 = vmax.f32 %v2987_v13, 0.0 }
 0x2c8   : > { %v3035_v47 = vpack.c.bf16 %v3025_v7, %v3024_v43 }
 0x2c9   : > { %v3034_v50 = vpack.c.bf16 %v3023_v19, %v3022_v44  ;;  %v4024_v51 = vpop.f32.mrb[76].mxu0  ;;  %v3617_v44 = vunpack.c.l.bf16 %v3631_v39 }
 0x2ca   : > { %v3008_v45 = vadd.f32 %v4024_v51, %v2911_v41  ;;  %v2999_v4 = vpop.f32.mrb[77].mxu0 }
 0x2cb   : > { %v3000_v54 = vadd.f32 %v2999_v4, %v5166_v23  ;;  %v4025_v55 = vpop.f32.mrb[78].mxu0  ;;  %4050 = vmatprep.mubr.bf16.mxu1 %v3034_v50  ;;  %v3627_v23 = vld [vmem:[%s5188_s21 + $0x8] sm:$0xff]   ;;  %v3613_v50 = vunpack.c.l.bf16 %v3630_v42  ;;  %v3618_v4 = vunpack.c.h.bf16 %v3631_v39 }
 0x2cc   : > { %v3011_v36 = vadd.f32 %v4025_v55, %v2914_v25  ;;  %v3002_v26 = vpop.f32.mrb[79].mxu0  ;;  %4051 = vmatmul.mubr.bf16.gmra.mrb[72].mxu1 %v3035_v47  ;;  %v3028_v57 = vmax.f32 %v3008_v45, 0.0  ;;  %v3601_v35 = vunpack.c.l.bf16 %v3627_v23  ;;  %v3602_v6 = vunpack.c.h.bf16 %v3627_v23  ;;  %v3632_v23 = vld [vmem:[%s5188_s21 + $0x30] sm:$0xff]  }
 0x2cd   : > { %v3003_v15 = vadd.f32 %v3002_v26, %v5168_v56  ;;  %v3026_v59 = vmax.f32 %v3000_v54, 0.0  ;;  %v5195_v56 = vld [vmem:[%s5305_s6] ss:$0 sm:$0xff] }
 0x2ce   : > { %v3029_v24 = vmax.f32 %v3011_v36, 0.0  ;;  %v3614_v36 = vunpack.c.h.bf16 %v3630_v42 }
 0x2cf   : > { %v3027_v60 = vmax.f32 %v3003_v15, 0.0 }
 0x2d0   : > { %v3037_v61 = vpack.c.bf16 %v3029_v24, %v3028_v57 }
 0x2d1   : > { %v3036_v17 = vpack.c.bf16 %v3027_v60, %v3026_v59  ;;  %v3633_v60 = vld [vmem:[%s5188_s21 + $0x38] sm:$0xff]   ;;  %s4349_s21 = smov [#allocation3]  }
 0x2d2   : > { %s4256_s9 = sshll.u32 %s4349_s21, 4  ;;  %s4257_s9 = int_to_ptr.vmem [resolvable:$false] %s4256_s9 }
 0x2d3   : > { %4054 = vmatprep.mubr.bf16.mxu1 %v3036_v17  ;;  %s4258_s10 = scalar_lea.vmem %s4257_s9, 4096  ;;  %p4259_p4 = scmp.lt.s32.totalorder %s5240_s28, %s4257_s9 }
 0x2d4   : > { %4055 = vmatmul.mubr.bf16.gmra.mrb[76].mxu1 %v3037_v61  ;;  %p4260_p5 = scmp.lt.s32.totalorder %s4258_s10, %s4252_s18 }
 0x2d6   : > { %p4261_p6 = por %p4260_p5, %p4259_p4 }
 0x2d8   : > { %p4262_p7 = pnand %p4261_p6, %p4255_p2 }
 0x38f   : > { %v4044_v1 = vpop.f32.mrb[64].mxu1 }
 0x390   : > { %v3152_v2 = vadd.f32 %v4044_v1, %v5195_v56  ;;  %v3143_v41 = vpop.f32.mrb[65].mxu1 }
 0x391   : > { %v3144_v46 = vadd.f32 %v5195_v56, %v3143_v41  ;;  %v4045_v18 = vpop.f32.mrb[66].mxu1 }
 0x392   : > { %v3242_v25 = vadd.f32 %v3601_v35, %v3152_v2  ;;  %v3155_v5 = vadd.f32 %v4045_v18, %v5195_v56  ;;  %v3146_v11 = vpop.f32.mrb[67].mxu1 }
 0x393   : > { %v3240_v14 = vadd.f32 %v3597_v48, %v3144_v46  ;;  %v3147_v12 = vadd.f32 %v5195_v56, %v3146_v11  ;;  %v3625_v48 = vunpack.c.l.bf16 %v3633_v60  ;;  %v3622_v11 = vunpack.c.h.bf16 %v3632_v23 }
 0x394   : > { %v3258_v16 = vmax.f32 %v3242_v25, 0.0  ;;  %v3243_v38 = vadd.f32 %v3602_v6, %v3155_v5  ;;  %v3621_v6 = vunpack.c.l.bf16 %v3632_v23 }
 0x395   : > { %v3256_v8 = vmax.f32 %v3240_v14, 0.0  ;;  %v3241_v21 = vadd.f32 %v3598_v9, %v3147_v12  ;;  %v3626_v9 = vunpack.c.h.bf16 %v3633_v60 }
 0x396   : > { %3274 = vst [vmem:[%s4473_s13 + $0x10] sm:$0xff] %v3258_v16  ;;  %v3259_v58 = vmax.f32 %v3243_v38, 0.0 }
 0x397   : > { %3272 = vst [vmem:[%s4473_s13] sm:$0xff] %v3256_v8  ;;  %v3257_v28 = vmax.f32 %v3241_v21, 0.0  ;;  %v4048_v63 = vpop.f32.mrb[68].mxu1 }
 0x398   : > { %3275 = vst [vmem:[%s4473_s13 + $0x18] sm:$0xff] %v3259_v58  ;;  %v3168_v27 = vadd.f32 %v4048_v63, %v5195_v56  ;;  %v3159_v3 = vpop.f32.mrb[69].mxu1 }
 0x399   : > { %3273 = vst [vmem:[%s4473_s13 + $0x8] sm:$0xff] %v3257_v28  ;;  %v3160_v22 = vadd.f32 %v5195_v56, %v3159_v3  ;;  %v4049_v31 = vpop.f32.mrb[70].mxu1 }
 0x39a   : > { %v3246_v33 = vadd.f32 %v3609_v37, %v3168_v27  ;;  %v3171_v34 = vadd.f32 %v4049_v31, %v5195_v56  ;;  %v3162_v52 = vpop.f32.mrb[71].mxu1 }
 0x39b   : > { %v3244_v30 = vadd.f32 %v3605_v0, %v3160_v22  ;;  %v3163_v10 = vadd.f32 %v5195_v56, %v3162_v52 }
 0x39c   : > { %v3262_v40 = vmax.f32 %v3246_v33, 0.0  ;;  %v3247_v62 = vadd.f32 %v3610_v29, %v3171_v34 }
 0x39d   : > { %v3260_v13 = vmax.f32 %v3244_v30, 0.0  ;;  %v3245_v43 = vadd.f32 %v3606_v32, %v3163_v10 }
 0x39e   : > { %3278 = vst [vmem:[%s4473_s13 + $0x30] sm:$0xff] %v3262_v40  ;;  %v3263_v7 = vmax.f32 %v3247_v62, 0.0 }
 0x39f   : > { %3276 = vst [vmem:[%s4473_s13 + $0x20] sm:$0xff] %v3260_v13  ;;  %v3261_v19 = vmax.f32 %v3245_v43, 0.0  ;;  %v4052_v47 = vpop.f32.mrb[72].mxu1 }
 0x3a0   : > { %3279 = vst [vmem:[%s4473_s13 + $0x38] sm:$0xff] %v3263_v7  ;;  %v3184_v51 = vadd.f32 %v4052_v47, %v5195_v56  ;;  %v3175_v45 = vpop.f32.mrb[73].mxu1 }
 0x3a1   : > { %3277 = vst [vmem:[%s4473_s13 + $0x28] sm:$0xff] %v3261_v19  ;;  %v3176_v54 = vadd.f32 %v5195_v56, %v3175_v45  ;;  %v4053_v55 = vpop.f32.mrb[74].mxu1 }
 0x3a2   : > { %v3250_v26 = vadd.f32 %v3617_v44, %v3184_v51  ;;  %v3187_v15 = vadd.f32 %v4053_v55, %v5195_v56  ;;  %v3178_v57 = vpop.f32.mrb[75].mxu1 }
 0x3a3   : > { %v3248_v24 = vadd.f32 %v3613_v50, %v3176_v54  ;;  %v3179_v59 = vadd.f32 %v5195_v56, %v3178_v57 }
 0x3a4   : > { %v3266_v61 = vmax.f32 %v3250_v26, 0.0  ;;  %v3251_v17 = vadd.f32 %v3618_v4, %v3187_v15 }
 0x3a5   : > { %v3264_v53 = vmax.f32 %v3248_v24, 0.0  ;;  %v3249_v35 = vadd.f32 %v3614_v36, %v3179_v59 }
 0x3a6   : > { %3282 = vst [vmem:[%s4473_s13 + $0x50] sm:$0xff] %v3266_v61  ;;  %v3267_v1 = vmax.f32 %v3251_v17, 0.0 }
 0x3a7   : > { %3280 = vst [vmem:[%s4473_s13 + $0x40] sm:$0xff] %v3264_v53  ;;  %v3265_v2 = vmax.f32 %v3249_v35, 0.0  ;;  %v4056_v41 = vpop.f32.mrb[76].mxu1 }
 0x3a8   : > { %3283 = vst [vmem:[%s4473_s13 + $0x58] sm:$0xff] %v3267_v1  ;;  %v3200_v46 = vadd.f32 %v4056_v41, %v5195_v56  ;;  %v3191_v18 = vpop.f32.mrb[77].mxu1 }
 0x3a9   : > { %3281 = vst [vmem:[%s4473_s13 + $0x48] sm:$0xff] %v3265_v2  ;;  %v3192_v25 = vadd.f32 %v5195_v56, %v3191_v18  ;;  %v4057_v5 = vpop.f32.mrb[78].mxu1 }
 0x3aa   : > { %v3254_v14 = vadd.f32 %v3625_v48, %v3200_v46  ;;  %v3203_v12 = vadd.f32 %v4057_v5, %v5195_v56  ;;  %v3194_v49 = vpop.f32.mrb[79].mxu1 }
 0x3ab   : > { %v3252_v16 = vadd.f32 %v3621_v6, %v3192_v25  ;;  %v3195_v38 = vadd.f32 %v5195_v56, %v3194_v49 }
 0x3ac   : > { %v3270_v20 = vmax.f32 %v3254_v14, 0.0  ;;  %v3255_v8 = vadd.f32 %v3626_v9, %v3203_v12 }
 0x3ad   : > { %v3268_v21 = vmax.f32 %v3252_v16, 0.0  ;;  %v3253_v58 = vadd.f32 %v3622_v11, %v3195_v38 }
 0x3ae   : > { %3286 = vst [vmem:[%s4473_s13 + $0x70] sm:$0xff] %v3270_v20  ;;  %v3271_v37 = vmax.f32 %v3255_v8, 0.0 }
 0x3af   : > { %3284 = vst [vmem:[%s4473_s13 + $0x60] sm:$0xff] %v3268_v21  ;;  %v3269_v56 = vmax.f32 %v3253_v58, 0.0 }
 0x3b0   : > { %3287 = vst [vmem:[%s4473_s13 + $0x78] sm:$0xff] %v3271_v37 }
 0x3b1   : > { %3285 = vst [vmem:[%s4473_s13 + $0x68] sm:$0xff] %v3269_v56 }
 0x3b2   : > { %4265 = shalt.err (!%p4262_p7)
}
 0x3b3   : > { %s4266_s13 = scalar_lea.hbm %s5238_s17, 2048  ;;  %s4270_s1 = scalar_lea.hbm %s5306_s7, 8192 }
 0x3b4   : > { %p4267_p9 = scmp.ne.s32.totalorder %s5238_s17, %s4266_s13  ;;  %p4271_p12 = scmp.lt.u32.totalorder %s5238_s17, %s5306_s7 }
 0x3b5   : > { %p4272_p13 = scmp.lt.u32.totalorder %s4270_s1, %s4266_s13  ;;  %p4274_p1 = scmp.lt.u32.totalorder %s4266_s13, %s5238_s17 }
 0x3b6   : > { %p4268_p10 = pnand %p4267_p9, %p4443_p3 }
 0x3b7   : > { %p4273_p0 = por %p4272_p13, %p4271_p12 }
 0x3b8   : > { %p4269_p11 = pneg %p4268_p10 }
 0x3b9   : > { %p4275_p2 = por %p4274_p1, %p4273_p0 }
 0x3bb   : > { %p4276_p4 = pnand %p4275_p2, %p4269_p11 }
 0x3bd   : > { %4279 = shalt.err (!%p4276_p4)
}
 0x3be   : > { %s4350_s16 = smov 128   ;;  %s4351_s0 = smov 8  }
 0x3bf   : > { %4074 = dma.vmem_to_hbm [thread:$0]  (%p4443_p3), %s5240_s28, 2048, %s5238_s17, %s5247_s20, %s4350_s16, %s4350_s16, %s4351_s0  }
 0x3c0 PF: > { %p4080_p5 = scmp.ge.s32.totalorder %s4346_s8, 2  ;;  %s3320_s18 = sand.u32 1, %s4318_s24  }
 0x3c1   : > { %s3321_s21 = scalar_lea.sflag [#allocation4], %s3320_s18 }
 0x3c2   : > { %p4077_p6 = pnand %p4080_p5, %p4452_p8 }
 0x3c4   : > { %4313 = dma.done.wait (!%p4077_p6), %s3321_s21, 2048  }
 0x3c5   : > { %4315 = vsyncadd (!%p4077_p6), %s3321_s21, 4294965248  ;;  %s20_s8 = sadd.s32 1, %s4346_s8   ;;  %s5317_s14 = sld [smem:[#allocation6_spill]] }
 0x3c6   : > { %p17_p7 = scmp.ge.s32.totalorder %s20_s8, 6   ;;  %s5318_s24 = smov %s4322_s25 }
 0x3c7   : > { %s5319_s25 = smov %s4326_s26  ;;  %s5320_s26 = smov %s4461_s19 }
 0x3c8   : > { %s5321_s27 = smov %s4338_s29  ;;  %s5322_s28 = smov %s4342_s30 }
 0x3c9   : > { %s5323_s29 = smov %s5326_s11  ;;  %19 = sbr.rel (!%p17_p7) target bundleno = 8 (0x8), region = 93 }
 0x3cb   : > { %s5324_s30 = smov %s5317_s14 }
 0x3d0   :  { %3326 = vsyncpa [#allocation4], 1 }
 0x3d1   :  { %3328 = vsyncpa [#allocation4 + $0x1], 1 }

</bundles_post_ra>
